<compile_context>
chip_gen: v7x
topology: tpu7x:2x2x1
jax: 0.10.0
libtpu: 0.0.40
codegen_flags: <defaults>
</compile_context>

<pallas_src>
import functools

import jax
import jax.numpy as jnp
from jax.experimental import pallas as pl
from jax.experimental.pallas import tpu as pltpu

VMEM_LIMIT = 48 * 1024 * 1024   # fits v7x (64 MiB/TC) with headroom; fine on v5e/v6e
LN_EPS = 1e-5


def _tile(m, pref=256):
    """Largest tile <= pref that divides m (keeps the 8-sublane constraint)."""
    if m <= pref:
        return m
    for t in (pref, 512, 256, 128, 64, 32, 16, 8):
        if t <= pref and m % t == 0:
            return t
    return m


# ----------------------------------------------------------------------------
# Fused QKV projection:  y = x @ [Wq*scale | Wk | Wv] + [bq*scale | bk | bv]
# ----------------------------------------------------------------------------
def qkv_proj_kernel(x_ref, w_ref, b_ref, o_ref):
    y = jnp.dot(x_ref[...], w_ref[...], preferred_element_type=jnp.float32)
    o_ref[...] = (y + b_ref[...]).astype(o_ref.dtype)


def qkv_proj(x, w, b):
    M, D = x.shape
    Nout = w.shape[1]
    tm = _tile(M)
    return pl.pallas_call(
        qkv_proj_kernel,
        out_shape=jax.ShapeDtypeStruct((M, Nout), x.dtype),
        grid=(M // tm,),
        in_specs=[
            pl.BlockSpec((tm, D), lambda i: (i, 0)),
            pl.BlockSpec((D, Nout), lambda i: (0, 0)),    # weights stay VMEM-resident
            pl.BlockSpec((1, Nout), lambda i: (0, 0)),
        ],
        out_specs=pl.BlockSpec((tm, Nout), lambda i: (i, 0)),
        compiler_params=pltpu.CompilerParams(
            dimension_semantics=("parallel",), vmem_limit_bytes=VMEM_LIMIT),
    )(x, w, b)


# ----------------------------------------------------------------------------
# Flash-style attention with additive relative-position bias
#   grid = (B, H, Q_tiles, KV_tiles); online softmax over the KV axis.
# ----------------------------------------------------------------------------
def attention_kernel(q_ref, k_ref, v_ref, bias_ref, o_ref, m_sc, l_sc, acc_sc):
    kv = pl.program_id(3)

    @pl.when(kv == 0)
    def _():
        m_sc[...] = jnp.full_like(m_sc, -jnp.inf)
        l_sc[...] = jnp.zeros_like(l_sc)
        acc_sc[...] = jnp.zeros_like(acc_sc)

    # scale is folded into W_q; contract the last dims directly (no K transpose)
    s = jax.lax.dot_general(q_ref[...], k_ref[...],
                            (((1,), (1,)), ((), ())),
                            preferred_element_type=jnp.float32)
    s = s + bias_ref[...]

    m_new = jnp.maximum(m_sc[...], jnp.max(s, axis=-1, keepdims=True))
    alpha = jnp.exp(m_sc[...] - m_new)
    p = jnp.exp(s - m_new)
    l_sc[...] = alpha * l_sc[...] + jnp.sum(p, axis=-1, keepdims=True)
    acc_sc[...] = alpha * acc_sc[...] + jnp.dot(
        p, v_ref[...], preferred_element_type=jnp.float32)
    m_sc[...] = m_new

    @pl.when(kv == pl.num_programs(3) - 1)
    def _():
        o_ref[...] = (acc_sc[...] *
                      pl.reciprocal(l_sc[...], approx=True)).astype(o_ref.dtype)


def attention(Q, K, V, bias, q_tile=256, kv_tile=512):
    """Q,K,V: (B,H,N,d); bias: (H,B,N,N).  Returns (B,H,N,dv)."""
    B, H, N, Dk = Q.shape
    Dv = V.shape[-1]
    tq = _tile(N, q_tile)
    tk = _tile(N, kv_tile)
    assert N % tq == 0 and N % tk == 0
    return pl.pallas_call(
        attention_kernel,
        out_shape=jax.ShapeDtypeStruct((B, H, N, Dv), Q.dtype),
        grid=(B, H, N // tq, N // tk),
        in_specs=[
            pl.BlockSpec((None, None, tq, Dk), lambda b, h, qi, ki: (b, h, qi, 0)),
            pl.BlockSpec((None, None, tk, Dk), lambda b, h, qi, ki: (b, h, ki, 0)),
            pl.BlockSpec((None, None, tk, Dv), lambda b, h, qi, ki: (b, h, ki, 0)),
            pl.BlockSpec((None, None, tq, tk), lambda b, h, qi, ki: (h, b, qi, ki)),
        ],
        out_specs=pl.BlockSpec((None, None, tq, Dv),
                               lambda b, h, qi, ki: (b, h, qi, 0)),
        scratch_shapes=[
            pltpu.VMEM((tq, 1), jnp.float32),     # running max
            pltpu.VMEM((tq, 1), jnp.float32),     # running denom
            pltpu.VMEM((tq, Dv), jnp.float32),    # running numerator
        ],
        compiler_params=pltpu.CompilerParams(
            dimension_semantics=("parallel", "parallel", "parallel", "arbitrary"),
            vmem_limit_bytes=VMEM_LIMIT),
    )(Q, K, V, bias)


# ----------------------------------------------------------------------------
# Fused output projection + residual add + LayerNorm
#   consumes attention output in (B, H, N, dv) layout (no head-merge transpose)
# ----------------------------------------------------------------------------
def o_proj_ln_kernel(a_ref, wo_ref, bo_ref, x_ref, g_ref, beta_ref, o_ref,
                     *, n_heads, eps):
    y = jnp.dot(a_ref[0], wo_ref[0], preferred_element_type=jnp.float32)
    for h in range(1, n_heads):
        y = y + jnp.dot(a_ref[h], wo_ref[h], preferred_element_type=jnp.float32)
    z = x_ref[...] + y + bo_ref[...]
    mean = jnp.mean(z, axis=-1, keepdims=True)
    var = jnp.mean((z - mean) ** 2, axis=-1, keepdims=True)
    zn = (z - mean) * jax.lax.rsqrt(var + eps)
    o_ref[...] = (zn * g_ref[...] + beta_ref[...]).astype(o_ref.dtype)


def o_proj_add_ln(attn, wo_h, bo, x, gamma, beta, eps=LN_EPS):
    """attn: (B,H,N,dv); wo_h: (H,dv,D); x: (B,N,D) residual."""
    B, H, N, Dv = attn.shape
    D = x.shape[-1]
    tn = _tile(N)
    kernel = functools.partial(o_proj_ln_kernel, n_heads=H, eps=eps)
    return pl.pallas_call(
        kernel,
        out_shape=jax.ShapeDtypeStruct((B, N, D), x.dtype),
        grid=(B, N // tn),
        in_specs=[
            pl.BlockSpec((None, H, tn, Dv), lambda b, i: (b, 0, i, 0)),
            pl.BlockSpec((H, Dv, D), lambda b, i: (0, 0, 0)),
            pl.BlockSpec((1, D), lambda b, i: (0, 0)),
            pl.BlockSpec((None, tn, D), lambda b, i: (b, i, 0)),
            pl.BlockSpec((1, D), lambda b, i: (0, 0)),
            pl.BlockSpec((1, D), lambda b, i: (0, 0)),
        ],
        out_specs=pl.BlockSpec((None, tn, D), lambda b, i: (b, i, 0)),
        compiler_params=pltpu.CompilerParams(
            dimension_semantics=("parallel", "parallel"),
            vmem_limit_bytes=VMEM_LIMIT),
    )(attn, wo_h, bo, x, gamma, beta)


# ----------------------------------------------------------------------------
# Fused feed-forward (Linear -> ReLU -> Linear) + residual add + LayerNorm
# ----------------------------------------------------------------------------
def ffn_ln_kernel(x_ref, w1_ref, b1_ref, w2_ref, b2_ref, g_ref, beta_ref,
                  o_ref, *, eps):
    x = x_ref[...]
    h = jnp.maximum(
        jnp.dot(x, w1_ref[...], preferred_element_type=jnp.float32) + b1_ref[...],
        0.0)
    y = jnp.dot(h, w2_ref[...], preferred_element_type=jnp.float32) + b2_ref[...]
    z = x + y
    mean = jnp.mean(z, axis=-1, keepdims=True)
    var = jnp.mean((z - mean) ** 2, axis=-1, keepdims=True)
    zn = (z - mean) * jax.lax.rsqrt(var + eps)
    o_ref[...] = (zn * g_ref[...] + beta_ref[...]).astype(o_ref.dtype)


def ffn_add_ln(x, w1, b1, w2, b2, gamma, beta, eps=LN_EPS):
    M, D = x.shape
    Dff = w1.shape[1]
    tm = _tile(M)
    kernel = functools.partial(ffn_ln_kernel, eps=eps)
    return pl.pallas_call(
        kernel,
        out_shape=jax.ShapeDtypeStruct((M, D), x.dtype),
        grid=(M // tm,),
        in_specs=[
            pl.BlockSpec((tm, D), lambda i: (i, 0)),
            pl.BlockSpec((D, Dff), lambda i: (0, 0)),
            pl.BlockSpec((1, Dff), lambda i: (0, 0)),
            pl.BlockSpec((Dff, D), lambda i: (0, 0)),
            pl.BlockSpec((1, D), lambda i: (0, 0)),
            pl.BlockSpec((1, D), lambda i: (0, 0)),
            pl.BlockSpec((1, D), lambda i: (0, 0)),
        ],
        out_specs=pl.BlockSpec((tm, D), lambda i: (i, 0)),
        compiler_params=pltpu.CompilerParams(
            dimension_semantics=("parallel",), vmem_limit_bytes=VMEM_LIMIT),
    )(x, w1, b1, w2, b2, gamma, beta)


# ----------------------------------------------------------------------------
# Plain-JAX glue: bilinear-interpolated 2D relative positional embeddings.
# Produced directly in (H, B, N, N) layout so no minor-dim transpose is needed.
# ----------------------------------------------------------------------------
def compute_rel_pos_bias(positions, emb, max_spatial_distance):
    """positions: (B,N,2) float; emb: (Gx,Gy,H).  Returns (H,B,N,N)."""
    Gx, Gy, H = emb.shape
    sx = float(max_spatial_distance[0] * 2 + 1)
    sy = float(max_spatial_distance[1] * 2 + 1)
    ox = float(-max_spatial_distance[0])
    oy = float(-max_spatial_distance[1])
    pos = positions.astype(jnp.float32)
    rel = pos[:, :, None, :] - pos[:, None, :, :]      # rel[b,i,j] = p_i - p_j
    x = (rel[..., 0] - ox) / sx * Gx
    y = (rel[..., 1] - oy) / sy * Gy
    x0 = jnp.clip(jnp.floor(x).astype(jnp.int32), 0, Gx - 1)
    x1 = jnp.clip(jnp.floor(x).astype(jnp.int32) + 1, 0, Gx - 1)
    y0 = jnp.clip(jnp.floor(y).astype(jnp.int32), 0, Gy - 1)
    y1 = jnp.clip(jnp.floor(y).astype(jnp.int32) + 1, 0, Gy - 1)
    dx = (x - x0.astype(jnp.float32))[None]            # (1,B,N,N)
    dy = (y - y0.astype(jnp.float32))[None]

    emb_t = jnp.transpose(emb, (2, 0, 1)).reshape(H, Gx * Gy)   # tiny (H, Gx*Gy)

    def gather(xi, yi):
        return emb_t[:, xi * Gy + yi]                  # (H,B,N,N)

    f00 = gather(x0, y0)
    f10 = gather(x1, y0)
    f01 = gather(x0, y1)
    f11 = gather(x1, y1)
    fx0 = f00 * (1.0 - dx) + f10 * dx
    fx1 = f01 * (1.0 - dx) + f11 * dx
    return fx0 * (1.0 - dy) + fx1 * dy                 # (H,B,N,N)


# ----------------------------------------------------------------------------
# One-time parameter preparation (outside the jitted forward):
#   fold 1/sqrt(d_k) into Wq/bq, concat Wq|Wk|Wv, reshape Wo per head.
# ----------------------------------------------------------------------------
def prepare_params(params, n_heads):
    layers = []
    for layer in params["layers"]:
        d_k = layer["wq"].shape[1] // n_heads
        d_v = layer["wo"].shape[0] // n_heads
        d_model = layer["wo"].shape[1]
        scale = 1.0 / float(d_k) ** 0.5
        layers.append(dict(
            wqkv=jnp.concatenate(
                [layer["wq"] * scale, layer["wk"], layer["wv"]], axis=1),
            bqkv=jnp.concatenate(
                [layer["bq"] * scale, layer["bk"], layer["bv"]], axis=1),
            wo_h=layer["wo"].reshape(n_heads, d_v, d_model),
            bo=layer["bo"],
            w1=layer["w1"], b1=layer["b1"], w2=layer["w2"], b2=layer["b2"],
            ln1_g=layer["ln1_g"], ln1_b=layer["ln1_b"],
            ln2_g=layer["ln2_g"], ln2_b=layer["ln2_b"],
            emb=layer["emb"],
        ))
    return {"layers": layers}


# ----------------------------------------------------------------------------
# Encoder forward (consumes prepared params)
# ----------------------------------------------------------------------------
def encoder_forward(prepared, X, positions, *, n_heads, max_spatial_distance):
    B, N, D = X.shape
    d_k = D // n_heads
    M = B * N

    for layer in prepared["layers"]:
        # Fused QKV projection (scale already folded into Wq / bq).
        qkv = qkv_proj(X.reshape(M, D), layer["wqkv"], layer["bqkv"])   # (M, 3*D)
        qkv = qkv.reshape(B, N, 3, n_heads, d_k).transpose(2, 0, 3, 1, 4)
        Q, K, V = qkv[0], qkv[1], qkv[2]                                # (B,H,N,d)

        bias = compute_rel_pos_bias(positions, layer["emb"],
                                    max_spatial_distance)               # (H,B,N,N)

        attn = attention(Q, K, V, bias)                                 # (B,H,N,dv)

        # Wo + residual + LayerNorm fused; consumes (B,H,N,dv) directly.
        X = o_proj_add_ln(attn, layer["wo_h"], layer["bo"], X,
                          layer["ln1_g"], layer["ln1_b"])

        # FFN + residual + LayerNorm fused.
        X = ffn_add_ln(X.reshape(M, D), layer["w1"], layer["b1"],
                       layer["w2"], layer["b2"],
                       layer["ln2_g"], layer["ln2_b"]).reshape(B, N, D)
        # Dropout: identity at inference.
    return X


# ----------------------------------------------------------------------------
# Deterministic parameter init (mimics nn.Linear / nn.LayerNorm / randn grid)
# ----------------------------------------------------------------------------
def init_params(key, *, n_layers, d_model, n_heads, d_ff, grid_shape):
    d_k = d_model // n_heads

    def lin_init(k, fan_in, fan_out):
        kw, kb = jax.random.split(k)
        bound = 1.0 / float(fan_in) ** 0.5
        w = jax.random.uniform(kw, (fan_in, fan_out), jnp.float32, -bound, bound)
        b = jax.random.uniform(kb, (1, fan_out), jnp.float32, -bound, bound)
        return w, b

    layers = []
    for l in range(n_layers):
        lk = jax.random.fold_in(key, l)
        ks = jax.random.split(lk, 7)
        wq, bq = lin_init(ks[0], d_model, d_k * n_heads)
        wk, bk = lin_init(ks[1], d_model, d_k * n_heads)
        wv, bv = lin_init(ks[2], d_model, d_k * n_heads)
        wo, bo = lin_init(ks[3], d_k * n_heads, d_model)
        w1, b1 = lin_init(ks[4], d_model, d_ff)
        w2, b2 = lin_init(ks[5], d_ff, d_model)
        emb = jax.random.normal(ks[6], (grid_shape[0], grid_shape[1], n_heads),
                                jnp.float32)
        layers.append(dict(
            wq=wq, bq=bq, wk=wk, bk=bk, wv=wv, bv=bv, wo=wo, bo=bo,
            w1=w1, b1=b1, w2=w2, b2=b2,
            ln1_g=jnp.ones((1, d_model), jnp.float32),
            ln1_b=jnp.zeros((1, d_model), jnp.float32),
            ln2_g=jnp.ones((1, d_model), jnp.float32),
            ln2_b=jnp.zeros((1, d_model), jnp.float32),
            emb=emb,
        ))
    return {"layers": layers}


# ----------------------------------------------------------------------------
if __name__ == "__main__":
    # Small config consistent with the module defaults (scaled down).
    n_layers = 2
    n_heads = 4
    d_model = 32
    d_ff = 64
    max_spatial_distance = (10, 10)
    grid_shape = (10, 10)
    B, N = 2, 8

    key = jax.random.PRNGKey(0)
    k_params, k_x, k_pos = jax.random.split(key, 3)

    raw = init_params(k_params, n_layers=n_layers, d_model=d_model,
                      n_heads=n_heads, d_ff=d_ff, grid_shape=grid_shape)
    prepared = prepare_params(raw, n_heads)          # one-time, outside jit

    X = jax.random.normal(k_x, (B, N, d_model), jnp.float32)
    positions = jax.random.uniform(k_pos, (B, N, 2), jnp.float32, 0.0, 10.0)

    fwd = jax.jit(functools.partial(
        encoder_forward, n_heads=n_heads,
        max_spatial_distance=max_spatial_distance))

    out = fwd(prepared, X, positions)
    jax.block_until_ready(out)
    assert out.shape == (B, N, d_model)
    print("KERNEL_OK")
</pallas_src>

<mosaic_0001>
module attributes {stable_mosaic.version = 11 : i64} {
  func.func @qkv_proj_kernel(%arg0: i32, %arg1: memref<16x32xf32, #tpu.memory_space<vmem>>, %arg2: memref<32x96xf32, #tpu.memory_space<vmem>>, %arg3: memref<1x96xf32, #tpu.memory_space<vmem>>, %arg4: memref<16x96xf32, #tpu.memory_space<vmem>>) attributes {dimension_semantics = [#tpu.dimension_semantics<parallel>], iteration_bounds = array<i64: 1>, scalar_prefetch = 0 : i64, scratch_operands = 0 : i64, tpu.core_type = #tpu.core_type<tc>, window_params = [{transform_indices = @transform_0, window_bounds = array<i64: 16, 32>}, {pipeline_mode = #tpu.pipeline_mode<synchronous>, transform_indices = @transform_1, window_bounds = array<i64: 32, 96>}, {pipeline_mode = #tpu.pipeline_mode<synchronous>, transform_indices = @transform_2, window_bounds = array<i64: 1, 96>}, {transform_indices = @transform_3, window_bounds = array<i64: 16, 96>}]} {
    %c0 = arith.constant 0 : index
    %c0_0 = arith.constant 0 : index
    %0 = vector.load %arg1[%c0, %c0_0] : memref<16x32xf32, #tpu.memory_space<vmem>>, vector<16x32xf32>
    %c0_1 = arith.constant 0 : index
    %c0_2 = arith.constant 0 : index
    %1 = vector.load %arg2[%c0_1, %c0_2] : memref<32x96xf32, #tpu.memory_space<vmem>>, vector<32x96xf32>
    %cst = arith.constant dense<0.000000e+00> : vector<16x96xf32>
    %2 = tpu.matmul %0, %1, %cst {dimension_numbers = #tpu.dot_dimension_numbers<[1], [0], [0], [1], [0, 0, 1, 1], [], []>} : vector<16x32xf32>, vector<32x96xf32>, vector<16x96xf32> -> vector<16x96xf32>
    %c0_3 = arith.constant 0 : index
    %c0_4 = arith.constant 0 : index
    %3 = vector.load %arg3[%c0_3, %c0_4] : memref<1x96xf32, #tpu.memory_space<vmem>>, vector<1x96xf32>
    %4 = vector.broadcast %3 : vector<1x96xf32> to vector<16x96xf32>
    %5 = arith.addf %2, %4 : vector<16x96xf32>
    %c0_5 = arith.constant 0 : index
    %c0_6 = arith.constant 0 : index
    %6 = vector.load %arg4[%c0_5, %c0_6] : memref<16x96xf32, #tpu.memory_space<vmem>>, vector<16x96xf32>
    tpu.vector_store %arg4[%c0_5, %c0_6], %5 {strides = array<i32>} : memref<16x96xf32, #tpu.memory_space<vmem>>, vector<16x96xf32>,
    return
  }
  func.func @transform_0(%arg0: i32) -> (i32, i32) {
    %c0_i32 = arith.constant 0 : i32
    %c0_i32_0 = arith.constant 0 : i32
    return %arg0, %c0_i32 : i32, i32
  }
  func.func @transform_1(%arg0: i32) -> (i32, i32) {
    %c0_i32 = arith.constant 0 : i32
    %c0_i32_0 = arith.constant 0 : i32
    %c0_i32_1 = arith.constant 0 : i32
    return %c0_i32, %c0_i32_0 : i32, i32
  }
  func.func @transform_2(%arg0: i32) -> (i32, i32) {
    %c0_i32 = arith.constant 0 : i32
    %c0_i32_0 = arith.constant 0 : i32
    %c0_i32_1 = arith.constant 0 : i32
    return %c0_i32, %c0_i32_0 : i32, i32
  }
  func.func @transform_3(%arg0: i32) -> (i32, i32) {
    %c0_i32 = arith.constant 0 : i32
    %c0_i32_0 = arith.constant 0 : i32
    return %arg0, %c0_i32 : i32, i32
  }
}

module attributes {stable_mosaic.version = 11 : i64} {
  func.func @o_proj_ln_kernel(%arg0: i32, %arg1: i32, %arg2: memref<1x4x8x8xf32, #tpu.memory_space<vmem>>, %arg3: memref<4x8x32xf32, #tpu.memory_space<vmem>>, %arg4: memref<1x32xf32, #tpu.memory_space<vmem>>, %arg5: memref<1x8x32xf32, #tpu.memory_space<vmem>>, %arg6: memref<1x32xf32, #tpu.memory_space<vmem>>, %arg7: memref<1x32xf32, #tpu.memory_space<vmem>>, %arg8: memref<1x8x32xf32, #tpu.memory_space<vmem>>) attributes {dimension_semantics = [#tpu.dimension_semantics<parallel>, #tpu.dimension_semantics<parallel>], iteration_bounds = array<i64: 2, 1>, scalar_prefetch = 0 : i64, scratch_operands = 0 : i64, tpu.core_type = #tpu.core_type<tc>, window_params = [{transform_indices = @transform_0, window_bounds = array<i64: 1, 4, 8, 8>}, {pipeline_mode = #tpu.pipeline_mode<synchronous>, transform_indices = @transform_1, window_bounds = array<i64: 4, 8, 32>}, {pipeline_mode = #tpu.pipeline_mode<synchronous>, transform_indices = @transform_2, window_bounds = array<i64: 1, 32>}, {transform_indices = @transform_3, window_bounds = array<i64: 1, 8, 32>}, {pipeline_mode = #tpu.pipeline_mode<synchronous>, transform_indices = @transform_4, window_bounds = array<i64: 1, 32>}, {pipeline_mode = #tpu.pipeline_mode<synchronous>, transform_indices = @transform_5, window_bounds = array<i64: 1, 32>}, {transform_indices = @transform_6, window_bounds = array<i64: 1, 8, 32>}]} {
    %c0 = arith.constant 0 : index
    %c0_0 = arith.constant 0 : index
    %c0_1 = arith.constant 0 : index
    %c0_2 = arith.constant 0 : index
    %0 = vector.load %arg2[%c0, %c0_0, %c0_1, %c0_2] : memref<1x4x8x8xf32, #tpu.memory_space<vmem>>, vector<1x1x8x8xf32>
    %1 = vector.shape_cast %0 : vector<1x1x8x8xf32> to vector<8x8xf32>
    %c0_3 = arith.constant 0 : index
    %c0_4 = arith.constant 0 : index
    %c0_5 = arith.constant 0 : index
    %2 = vector.load %arg3[%c0_3, %c0_4, %c0_5] : memref<4x8x32xf32, #tpu.memory_space<vmem>>, vector<1x8x32xf32>
    %3 = vector.shape_cast %2 : vector<1x8x32xf32> to vector<8x32xf32>
    %cst = arith.constant dense<0.000000e+00> : vector<8x32xf32>
    %4 = tpu.matmul %1, %3, %cst {dimension_numbers = #tpu.dot_dimension_numbers<[1], [0], [0], [1], [0, 0, 1, 1], [], []>} : vector<8x8xf32>, vector<8x32xf32>, vector<8x32xf32> -> vector<8x32xf32>
    %c0_6 = arith.constant 0 : index
    %c1 = arith.constant 1 : index
    %c0_7 = arith.constant 0 : index
    %c0_8 = arith.constant 0 : index
    %5 = vector.load %arg2[%c0_6, %c1, %c0_7, %c0_8] : memref<1x4x8x8xf32, #tpu.memory_space<vmem>>, vector<1x1x8x8xf32>
    %6 = vector.shape_cast %5 : vector<1x1x8x8xf32> to vector<8x8xf32>
    %c1_9 = arith.constant 1 : index
    %c0_10 = arith.constant 0 : index
    %c0_11 = arith.constant 0 : index
    %7 = vector.load %arg3[%c1_9, %c0_10, %c0_11] : memref<4x8x32xf32, #tpu.memory_space<vmem>>, vector<1x8x32xf32>
    %8 = vector.shape_cast %7 : vector<1x8x32xf32> to vector<8x32xf32>
    %cst_12 = arith.constant dense<0.000000e+00> : vector<8x32xf32>
    %9 = tpu.matmul %6, %8, %cst_12 {dimension_numbers = #tpu.dot_dimension_numbers<[1], [0], [0], [1], [0, 0, 1, 1], [], []>} : vector<8x8xf32>, vector<8x32xf32>, vector<8x32xf32> -> vector<8x32xf32>
    %10 = arith.addf %4, %9 : vector<8x32xf32>
    %c0_13 = arith.constant 0 : index
    %c2 = arith.constant 2 : index
    %c0_14 = arith.constant 0 : index
    %c0_15 = arith.constant 0 : index
    %11 = vector.load %arg2[%c0_13, %c2, %c0_14, %c0_15] : memref<1x4x8x8xf32, #tpu.memory_space<vmem>>, vector<1x1x8x8xf32>
    %12 = vector.shape_cast %11 : vector<1x1x8x8xf32> to vector<8x8xf32>
    %c2_16 = arith.constant 2 : index
    %c0_17 = arith.constant 0 : index
    %c0_18 = arith.constant 0 : index
    %13 = vector.load %arg3[%c2_16, %c0_17, %c0_18] : memref<4x8x32xf32, #tpu.memory_space<vmem>>, vector<1x8x32xf32>
    %14 = vector.shape_cast %13 : vector<1x8x32xf32> to vector<8x32xf32>
    %cst_19 = arith.constant dense<0.000000e+00> : vector<8x32xf32>
    %15 = tpu.matmul %12, %14, %cst_19 {dimension_numbers = #tpu.dot_dimension_numbers<[1], [0], [0], [1], [0, 0, 1, 1], [], []>} : vector<8x8xf32>, vector<8x32xf32>, vector<8x32xf32> -> vector<8x32xf32>
    %16 = arith.addf %10, %15 : vector<8x32xf32>
    %c0_20 = arith.constant 0 : index
    %c3 = arith.constant 3 : index
    %c0_21 = arith.constant 0 : index
    %c0_22 = arith.constant 0 : index
    %17 = vector.load %arg2[%c0_20, %c3, %c0_21, %c0_22] : memref<1x4x8x8xf32, #tpu.memory_space<vmem>>, vector<1x1x8x8xf32>
    %18 = vector.shape_cast %17 : vector<1x1x8x8xf32> to vector<8x8xf32>
    %c3_23 = arith.constant 3 : index
    %c0_24 = arith.constant 0 : index
    %c0_25 = arith.constant 0 : index
    %19 = vector.load %arg3[%c3_23, %c0_24, %c0_25] : memref<4x8x32xf32, #tpu.memory_space<vmem>>, vector<1x8x32xf32>
    %20 = vector.shape_cast %19 : vector<1x8x32xf32> to vector<8x32xf32>
    %cst_26 = arith.constant dense<0.000000e+00> : vector<8x32xf32>
    %21 = tpu.matmul %18, %20, %cst_26 {dimension_numbers = #tpu.dot_dimension_numbers<[1], [0], [0], [1], [0, 0, 1, 1], [], []>} : vector<8x8xf32>, vector<8x32xf32>, vector<8x32xf32> -> vector<8x32xf32>
    %22 = arith.addf %16, %21 : vector<8x32xf32>
    %c0_27 = arith.constant 0 : index
    %c0_28 = arith.constant 0 : index
    %c0_29 = arith.constant 0 : index
    %23 = vector.load %arg5[%c0_27, %c0_28, %c0_29] : memref<1x8x32xf32, #tpu.memory_space<vmem>>, vector<1x8x32xf32>
    %24 = vector.shape_cast %23 : vector<1x8x32xf32> to vector<8x32xf32>
    %25 = arith.addf %24, %22 : vector<8x32xf32>
    %c0_30 = arith.constant 0 : index
    %c0_31 = arith.constant 0 : index
    %26 = vector.load %arg4[%c0_30, %c0_31] : memref<1x32xf32, #tpu.memory_space<vmem>>, vector<1x32xf32>
    %27 = vector.broadcast %26 : vector<1x32xf32> to vector<8x32xf32>
    %28 = arith.addf %25, %27 : vector<8x32xf32>
    %cst_32 = arith.constant dense<0.000000e+00> : vector<8xf32>
    %29 = vector.multi_reduction <add>, %28, %cst_32 [1] : vector<8x32xf32> to vector<8xf32>
    %30 = vector.shape_cast %29 : vector<8xf32> to vector<8x1xf32>
    %cst_33 = arith.constant 3.200000e+01 : f32
    %31 = vector.broadcast %cst_33 : f32 to vector<8x1xf32>
    %32 = arith.divf %30, %31 : vector<8x1xf32>
    %33 = vector.broadcast %32 : vector<8x1xf32> to vector<8x32xf32>
    %34 = arith.subf %28, %33 : vector<8x32xf32>
    %35 = arith.mulf %34, %34 : vector<8x32xf32>
    %cst_34 = arith.constant dense<0.000000e+00> : vector<8xf32>
    %36 = vector.multi_reduction <add>, %35, %cst_34 [1] : vector<8x32xf32> to vector<8xf32>
    %37 = vector.shape_cast %36 : vector<8xf32> to vector<8x1xf32>
    %cst_35 = arith.constant 3.200000e+01 : f32
    %38 = vector.broadcast %cst_35 : f32 to vector<8x1xf32>
    %39 = arith.divf %37, %38 : vector<8x1xf32>
    %40 = vector.broadcast %32 : vector<8x1xf32> to vector<8x32xf32>
    %41 = arith.subf %28, %40 : vector<8x32xf32>
    %cst_36 = arith.constant 9.99999974E-6 : f32
    %42 = vector.broadcast %cst_36 : f32 to vector<8x1xf32>
    %43 = arith.addf %39, %42 : vector<8x1xf32>
    %44 = math.rsqrt %43 : vector<8x1xf32>
    %45 = vector.broadcast %44 : vector<8x1xf32> to vector<8x32xf32>
    %46 = arith.mulf %41, %45 : vector<8x32xf32>
    %c0_37 = arith.constant 0 : index
    %c0_38 = arith.constant 0 : index
    %47 = vector.load %arg6[%c0_37, %c0_38] : memref<1x32xf32, #tpu.memory_space<vmem>>, vector<1x32xf32>
    %48 = vector.broadcast %47 : vector<1x32xf32> to vector<8x32xf32>
    %49 = arith.mulf %46, %48 : vector<8x32xf32>
    %c0_39 = arith.constant 0 : index
    %c0_40 = arith.constant 0 : index
    %50 = vector.load %arg7[%c0_39, %c0_40] : memref<1x32xf32, #tpu.memory_space<vmem>>, vector<1x32xf32>
    %51 = vector.broadcast %50 : vector<1x32xf32> to vector<8x32xf32>
    %52 = arith.addf %49, %51 : vector<8x32xf32>
    %c0_41 = arith.constant 0 : index
    %c0_42 = arith.constant 0 : index
    %c0_43 = arith.constant 0 : index
    %53 = vector.load %arg8[%c0_41, %c0_42, %c0_43] : memref<1x8x32xf32, #tpu.memory_space<vmem>>, vector<1x8x32xf32>
    %54 = vector.shape_cast %53 : vector<1x8x32xf32> to vector<8x32xf32>
    %55 = vector.shape_cast %52 : vector<8x32xf32> to vector<1x8x32xf32>
    tpu.vector_store %arg8[%c0_41, %c0_42, %c0_43], %55 {strides = array<i32>} : memref<1x8x32xf32, #tpu.memory_space<vmem>>, vector<1x8x32xf32>,
    return
  }
  func.func @transform_0(%arg0: i32, %arg1: i32) -> (i32, i32, i32, i32) {
    %c0_i32 = arith.constant 0 : i32
    %c0_i32_0 = arith.constant 0 : i32
    %c0_i32_1 = arith.constant 0 : i32
    return %arg0, %c0_i32, %arg1, %c0_i32_0 : i32, i32, i32, i32
  }
  func.func @transform_1(%arg0: i32, %arg1: i32) -> (i32, i32, i32) {
    %c0_i32 = arith.constant 0 : i32
    %c0_i32_0 = arith.constant 0 : i32
    %c0_i32_1 = arith.constant 0 : i32
    %c0_i32_2 = arith.constant 0 : i32
    return %c0_i32, %c0_i32_0, %c0_i32_1 : i32, i32, i32
  }
  func.func @transform_2(%arg0: i32, %arg1: i32) -> (i32, i32) {
    %c0_i32 = arith.constant 0 : i32
    %c0_i32_0 = arith.constant 0 : i32
    %c0_i32_1 = arith.constant 0 : i32
    return %c0_i32, %c0_i32_0 : i32, i32
  }
  func.func @transform_3(%arg0: i32, %arg1: i32) -> (i32, i32, i32) {
    %c0_i32 = arith.constant 0 : i32
    %c0_i32_0 = arith.constant 0 : i32
    return %arg0, %arg1, %c0_i32 : i32, i32, i32
  }
  func.func @transform_4(%arg0: i32, %arg1: i32) -> (i32, i32) {
    %c0_i32 = arith.constant 0 : i32
    %c0_i32_0 = arith.constant 0 : i32
    %c0_i32_1 = arith.constant 0 : i32
    return %c0_i32, %c0_i32_0 : i32, i32
  }
  func.func @transform_5(%arg0: i32, %arg1: i32) -> (i32, i32) {
    %c0_i32 = arith.constant 0 : i32
    %c0_i32_0 = arith.constant 0 : i32
    %c0_i32_1 = arith.constant 0 : i32
    return %c0_i32, %c0_i32_0 : i32, i32
  }
  func.func @transform_6(%arg0: i32, %arg1: i32) -> (i32, i32, i32) {
    %c0_i32 = arith.constant 0 : i32
    %c0_i32_0 = arith.constant 0 : i32
    return %arg0, %arg1, %c0_i32 : i32, i32, i32
  }
}

module attributes {stable_mosaic.version = 11 : i64} {
  func.func @attention_kernel(%arg0: i32, %arg1: i32, %arg2: i32, %arg3: i32, %arg4: memref<1x1x8x8xf32, #tpu.memory_space<vmem>>, %arg5: memref<1x1x8x8xf32, #tpu.memory_space<vmem>>, %arg6: memref<1x1x8x8xf32, #tpu.memory_space<vmem>>, %arg7: memref<1x1x8x8xf32, #tpu.memory_space<vmem>>, %arg8: memref<1x1x8x8xf32, #tpu.memory_space<vmem>>, %arg9: memref<8x1xf32, #tpu.memory_space<vmem>>, %arg10: memref<8x1xf32, #tpu.memory_space<vmem>>, %arg11: memref<8x8xf32, #tpu.memory_space<vmem>>) attributes {dimension_semantics = [#tpu.dimension_semantics<parallel>, #tpu.dimension_semantics<parallel>, #tpu.dimension_semantics<parallel>, #tpu.dimension_semantics<arbitrary>], iteration_bounds = array<i64: 2, 4, 1, 1>, scalar_prefetch = 0 : i64, scratch_operands = 3 : i64, tpu.core_type = #tpu.core_type<tc>, window_params = [{transform_indices = @transform_0, window_bounds = array<i64: 1, 1, 8, 8>}, {transform_indices = @transform_1, window_bounds = array<i64: 1, 1, 8, 8>}, {transform_indices = @transform_2, window_bounds = array<i64: 1, 1, 8, 8>}, {transform_indices = @transform_3, window_bounds = array<i64: 1, 1, 8, 8>}, {transform_indices = @transform_4, window_bounds = array<i64: 1, 1, 8, 8>}]} {
    %c0_i32 = arith.constant 0 : i32
    %0 = arith.cmpi eq, %arg3, %c0_i32 : i32
    %1 = arith.extui %0 : i1 to i32
    %c0_i32_0 = arith.constant 0 : i32
    %2 = arith.cmpi ne, %1, %c0_i32_0 : i32
    scf.if %2 {
      %cst_35 = arith.constant 0xFF800000 : f32
      %39 = vector.broadcast %cst_35 : f32 to vector<8x1xf32>
      %c0_36 = arith.constant 0 : index
      %c0_37 = arith.constant 0 : index
      %40 = vector.load %arg9[%c0_36, %c0_37] : memref<8x1xf32, #tpu.memory_space<vmem>>, vector<8x1xf32>
      tpu.vector_store %arg9[%c0_36, %c0_37], %39 {strides = array<i32>} : memref<8x1xf32, #tpu.memory_space<vmem>>, vector<8x1xf32>,
      %cst_38 = arith.constant 0.000000e+00 : f32
      %41 = vector.broadcast %cst_38 : f32 to vector<8x1xf32>
      %c0_39 = arith.constant 0 : index
      %c0_40 = arith.constant 0 : index
      %42 = vector.load %arg10[%c0_39, %c0_40] : memref<8x1xf32, #tpu.memory_space<vmem>>, vector<8x1xf32>
      tpu.vector_store %arg10[%c0_39, %c0_40], %41 {strides = array<i32>} : memref<8x1xf32, #tpu.memory_space<vmem>>, vector<8x1xf32>,
      %cst_41 = arith.constant 0.000000e+00 : f32
      %43 = vector.broadcast %cst_41 : f32 to vector<8x8xf32>
      %c0_42 = arith.constant 0 : index
      %c0_43 = arith.constant 0 : index
      %44 = vector.load %arg11[%c0_42, %c0_43] : memref<8x8xf32, #tpu.memory_space<vmem>>, vector<8x8xf32>
      tpu.vector_store %arg11[%c0_42, %c0_43], %43 {strides = array<i32>} : memref<8x8xf32, #tpu.memory_space<vmem>>, vector<8x8xf32>,
    } else {
    }
    %c0 = arith.constant 0 : index
    %c0_1 = arith.constant 0 : index
    %c0_2 = arith.constant 0 : index
    %c0_3 = arith.constant 0 : index
    %3 = vector.load %arg4[%c0, %c0_1, %c0_2, %c0_3] : memref<1x1x8x8xf32, #tpu.memory_space<vmem>>, vector<1x1x8x8xf32>
    %4 = vector.shape_cast %3 : vector<1x1x8x8xf32> to vector<8x8xf32>
    %c0_4 = arith.constant 0 : index
    %c0_5 = arith.constant 0 : index
    %c0_6 = arith.constant 0 : index
    %c0_7 = arith.constant 0 : index
    %5 = vector.load %arg5[%c0_4, %c0_5, %c0_6, %c0_7] : memref<1x1x8x8xf32, #tpu.memory_space<vmem>>, vector<1x1x8x8xf32>
    %6 = vector.shape_cast %5 : vector<1x1x8x8xf32> to vector<8x8xf32>
    %cst = arith.constant dense<0.000000e+00> : vector<8x8xf32>
    %7 = tpu.matmul %4, %6, %cst {dimension_numbers = #tpu.dot_dimension_numbers<[1], [1], [0], [0], [0, 0, 1, 0], [], []>} : vector<8x8xf32>, vector<8x8xf32>, vector<8x8xf32> -> vector<8x8xf32>
    %c0_8 = arith.constant 0 : index
    %c0_9 = arith.constant 0 : index
    %c0_10 = arith.constant 0 : index
    %c0_11 = arith.constant 0 : index
    %8 = vector.load %arg7[%c0_8, %c0_9, %c0_10, %c0_11] : memref<1x1x8x8xf32, #tpu.memory_space<vmem>>, vector<1x1x8x8xf32>
    %9 = vector.shape_cast %8 : vector<1x1x8x8xf32> to vector<8x8xf32>
    %10 = arith.addf %7, %9 : vector<8x8xf32>
    %c0_12 = arith.constant 0 : index
    %c0_13 = arith.constant 0 : index
    %11 = vector.load %arg9[%c0_12, %c0_13] : memref<8x1xf32, #tpu.memory_space<vmem>>, vector<8x1xf32>
    %cst_14 = arith.constant dense<0xFF800000> : vector<8xf32>
    %12 = vector.multi_reduction <maximumf>, %10, %cst_14 [1] : vector<8x8xf32> to vector<8xf32>
    %13 = vector.shape_cast %12 : vector<8xf32> to vector<8x1xf32>
    %14 = arith.maximumf %11, %13 : vector<8x1xf32>
    %c0_15 = arith.constant 0 : index
    %c0_16 = arith.constant 0 : index
    %15 = vector.load %arg9[%c0_15, %c0_16] : memref<8x1xf32, #tpu.memory_space<vmem>>, vector<8x1xf32>
    %16 = arith.subf %15, %14 : vector<8x1xf32>
    %17 = math.exp %16 : vector<8x1xf32>
    %18 = vector.broadcast %14 : vector<8x1xf32> to vector<8x8xf32>
    %19 = arith.subf %10, %18 : vector<8x8xf32>
    %20 = math.exp %19 : vector<8x8xf32>
    %c0_17 = arith.constant 0 : index
    %c0_18 = arith.constant 0 : index
    %21 = vector.load %arg10[%c0_17, %c0_18] : memref<8x1xf32, #tpu.memory_space<vmem>>, vector<8x1xf32>
    %22 = arith.mulf %17, %21 : vector<8x1xf32>
    %cst_19 = arith.constant dense<0.000000e+00> : vector<8xf32>
    %23 = vector.multi_reduction <add>, %20, %cst_19 [1] : vector<8x8xf32> to vector<8xf32>
    %24 = vector.shape_cast %23 : vector<8xf32> to vector<8x1xf32>
    %25 = arith.addf %22, %24 : vector<8x1xf32>
    %c0_20 = arith.constant 0 : index
    %c0_21 = arith.constant 0 : index
    %26 = vector.load %arg10[%c0_20, %c0_21] : memref<8x1xf32, #tpu.memory_space<vmem>>, vector<8x1xf32>
    tpu.vector_store %arg10[%c0_20, %c0_21], %25 {strides = array<i32>} : memref<8x1xf32, #tpu.memory_space<vmem>>, vector<8x1xf32>,
    %c0_22 = arith.constant 0 : index
    %c0_23 = arith.constant 0 : index
    %27 = vector.load %arg11[%c0_22, %c0_23] : memref<8x8xf32, #tpu.memory_space<vmem>>, vector<8x8xf32>
    %28 = vector.broadcast %17 : vector<8x1xf32> to vector<8x8xf32>
    %29 = arith.mulf %28, %27 : vector<8x8xf32>
    %c0_24 = arith.constant 0 : index
    %c0_25 = arith.constant 0 : index
    %c0_26 = arith.constant 0 : index
    %c0_27 = arith.constant 0 : index
    %30 = vector.load %arg6[%c0_24, %c0_25, %c0_26, %c0_27] : memref<1x1x8x8xf32, #tpu.memory_space<vmem>>, vector<1x1x8x8xf32>
    %31 = vector.shape_cast %30 : vector<1x1x8x8xf32> to vector<8x8xf32>
    %cst_28 = arith.constant dense<0.000000e+00> : vector<8x8xf32>
    %32 = tpu.matmul %20, %31, %cst_28 {dimension_numbers = #tpu.dot_dimension_numbers<[1], [0], [0], [1], [0, 0, 1, 1], [], []>} : vector<8x8xf32>, vector<8x8xf32>, vector<8x8xf32> -> vector<8x8xf32>
    %33 = arith.addf %29, %32 : vector<8x8xf32>
    %c0_29 = arith.constant 0 : index
    %c0_30 = arith.constant 0 : index
    %34 = vector.load %arg11[%c0_29, %c0_30] : memref<8x8xf32, #tpu.memory_space<vmem>>, vector<8x8xf32>
    tpu.vector_store %arg11[%c0_29, %c0_30], %33 {strides = array<i32>} : memref<8x8xf32, #tpu.memory_space<vmem>>, vector<8x8xf32>,
    %c0_31 = arith.constant 0 : index
    %c0_32 = arith.constant 0 : index
    %35 = vector.load %arg9[%c0_31, %c0_32] : memref<8x1xf32, #tpu.memory_space<vmem>>, vector<8x1xf32>
    tpu.vector_store %arg9[%c0_31, %c0_32], %14 {strides = array<i32>} : memref<8x1xf32, #tpu.memory_space<vmem>>, vector<8x1xf32>,
    %c0_i32_33 = arith.constant 0 : i32
    %36 = arith.cmpi eq, %arg3, %c0_i32_33 : i32
    %37 = arith.extui %36 : i1 to i32
    %c0_i32_34 = arith.constant 0 : i32
    %38 = arith.cmpi ne, %37, %c0_i32_34 : i32
    scf.if %38 {
      %c0_35 = arith.constant 0 : index
      %c0_36 = arith.constant 0 : index
      %39 = vector.load %arg11[%c0_35, %c0_36] : memref<8x8xf32, #tpu.memory_space<vmem>>, vector<8x8xf32>
      %c0_37 = arith.constant 0 : index
      %c0_38 = arith.constant 0 : index
      %40 = vector.load %arg10[%c0_37, %c0_38] : memref<8x1xf32, #tpu.memory_space<vmem>>, vector<8x1xf32>
      %41 = tpu.reciprocal %40 {approx = true} : vector<8x1xf32> -> vector<8x1xf32>
      %42 = vector.broadcast %41 : vector<8x1xf32> to vector<8x8xf32>
      %43 = arith.mulf %39, %42 : vector<8x8xf32>
      %c0_39 = arith.constant 0 : index
      %c0_40 = arith.constant 0 : index
      %c0_41 = arith.constant 0 : index
      %c0_42 = arith.constant 0 : index
      %44 = vector.load %arg8[%c0_39, %c0_40, %c0_41, %c0_42] : memref<1x1x8x8xf32, #tpu.memory_space<vmem>>, vector<1x1x8x8xf32>
      %45 = vector.shape_cast %44 : vector<1x1x8x8xf32> to vector<8x8xf32>
      %46 = vector.shape_cast %43 : vector<8x8xf32> to vector<1x1x8x8xf32>
      tpu.vector_store %arg8[%c0_39, %c0_40, %c0_41, %c0_42], %46 {strides = array<i32>} : memref<1x1x8x8xf32, #tpu.memory_space<vmem>>, vector<1x1x8x8xf32>,
    } else {
    }
    return
  }
  func.func @transform_0(%arg0: i32, %arg1: i32, %arg2: i32, %arg3: i32) -> (i32, i32, i32, i32) {
    %c0_i32 = arith.constant 0 : i32
    %c0_i32_0 = arith.constant 0 : i32
    return %arg0, %arg1, %arg2, %c0_i32 : i32, i32, i32, i32
  }
  func.func @transform_1(%arg0: i32, %arg1: i32, %arg2: i32, %arg3: i32) -> (i32, i32, i32, i32) {
    %c0_i32 = arith.constant 0 : i32
    %c0_i32_0 = arith.constant 0 : i32
    return %arg0, %arg1, %arg3, %c0_i32 : i32, i32, i32, i32
  }
  func.func @transform_2(%arg0: i32, %arg1: i32, %arg2: i32, %arg3: i32) -> (i32, i32, i32, i32) {
    %c0_i32 = arith.constant 0 : i32
    %c0_i32_0 = arith.constant 0 : i32
    return %arg0, %arg1, %arg3, %c0_i32 : i32, i32, i32, i32
  }
  func.func @transform_3(%arg0: i32, %arg1: i32, %arg2: i32, %arg3: i32) -> (i32, i32, i32, i32) {
    %c0_i32 = arith.constant 0 : i32
    return %arg1, %arg0, %arg2, %arg3 : i32, i32, i32, i32
  }
  func.func @transform_4(%arg0: i32, %arg1: i32, %arg2: i32, %arg3: i32) -> (i32, i32, i32, i32) {
    %c0_i32 = arith.constant 0 : i32
    %c0_i32_0 = arith.constant 0 : i32
    return %arg0, %arg1, %arg2, %c0_i32 : i32, i32, i32, i32
  }
}

module attributes {stable_mosaic.version = 11 : i64} {
  func.func @ffn_ln_kernel(%arg0: i32, %arg1: memref<16x32xf32, #tpu.memory_space<vmem>>, %arg2: memref<32x64xf32, #tpu.memory_space<vmem>>, %arg3: memref<1x64xf32, #tpu.memory_space<vmem>>, %arg4: memref<64x32xf32, #tpu.memory_space<vmem>>, %arg5: memref<1x32xf32, #tpu.memory_space<vmem>>, %arg6: memref<1x32xf32, #tpu.memory_space<vmem>>, %arg7: memref<1x32xf32, #tpu.memory_space<vmem>>, %arg8: memref<16x32xf32, #tpu.memory_space<vmem>>) attributes {dimension_semantics = [#tpu.dimension_semantics<parallel>], iteration_bounds = array<i64: 1>, scalar_prefetch = 0 : i64, scratch_operands = 0 : i64, tpu.core_type = #tpu.core_type<tc>, window_params = [{transform_indices = @transform_0, window_bounds = array<i64: 16, 32>}, {pipeline_mode = #tpu.pipeline_mode<synchronous>, transform_indices = @transform_1, window_bounds = array<i64: 32, 64>}, {pipeline_mode = #tpu.pipeline_mode<synchronous>, transform_indices = @transform_2, window_bounds = array<i64: 1, 64>}, {pipeline_mode = #tpu.pipeline_mode<synchronous>, transform_indices = @transform_3, window_bounds = array<i64: 64, 32>}, {pipeline_mode = #tpu.pipeline_mode<synchronous>, transform_indices = @transform_4, window_bounds = array<i64: 1, 32>}, {pipeline_mode = #tpu.pipeline_mode<synchronous>, transform_indices = @transform_5, window_bounds = array<i64: 1, 32>}, {pipeline_mode = #tpu.pipeline_mode<synchronous>, transform_indices = @transform_6, window_bounds = array<i64: 1, 32>}, {transform_indices = @transform_7, window_bounds = array<i64: 16, 32>}]} {
    %c0 = arith.constant 0 : index
    %c0_0 = arith.constant 0 : index
    %0 = vector.load %arg1[%c0, %c0_0] : memref<16x32xf32, #tpu.memory_space<vmem>>, vector<16x32xf32>
    %c0_1 = arith.constant 0 : index
    %c0_2 = arith.constant 0 : index
    %1 = vector.load %arg2[%c0_1, %c0_2] : memref<32x64xf32, #tpu.memory_space<vmem>>, vector<32x64xf32>
    %cst = arith.constant dense<0.000000e+00> : vector<16x64xf32>
    %2 = tpu.matmul %0, %1, %cst {dimension_numbers = #tpu.dot_dimension_numbers<[1], [0], [0], [1], [0, 0, 1, 1], [], []>} : vector<16x32xf32>, vector<32x64xf32>, vector<16x64xf32> -> vector<16x64xf32>
    %c0_3 = arith.constant 0 : index
    %c0_4 = arith.constant 0 : index
    %3 = vector.load %arg3[%c0_3, %c0_4] : memref<1x64xf32, #tpu.memory_space<vmem>>, vector<1x64xf32>
    %4 = vector.broadcast %3 : vector<1x64xf32> to vector<16x64xf32>
    %5 = arith.addf %2, %4 : vector<16x64xf32>
    %cst_5 = arith.constant 0.000000e+00 : f32
    %6 = vector.broadcast %cst_5 : f32 to vector<16x64xf32>
    %7 = arith.maximumf %5, %6 : vector<16x64xf32>
    %c0_6 = arith.constant 0 : index
    %c0_7 = arith.constant 0 : index
    %8 = vector.load %arg4[%c0_6, %c0_7] : memref<64x32xf32, #tpu.memory_space<vmem>>, vector<64x32xf32>
    %cst_8 = arith.constant dense<0.000000e+00> : vector<16x32xf32>
    %9 = tpu.matmul %7, %8, %cst_8 {dimension_numbers = #tpu.dot_dimension_numbers<[1], [0], [0], [1], [0, 0, 1, 1], [], []>} : vector<16x64xf32>, vector<64x32xf32>, vector<16x32xf32> -> vector<16x32xf32>
    %c0_9 = arith.constant 0 : index
    %c0_10 = arith.constant 0 : index
    %10 = vector.load %arg5[%c0_9, %c0_10] : memref<1x32xf32, #tpu.memory_space<vmem>>, vector<1x32xf32>
    %11 = vector.broadcast %10 : vector<1x32xf32> to vector<16x32xf32>
    %12 = arith.addf %9, %11 : vector<16x32xf32>
    %13 = arith.addf %0, %12 : vector<16x32xf32>
    %cst_11 = arith.constant dense<0.000000e+00> : vector<16xf32>
    %14 = vector.multi_reduction <add>, %13, %cst_11 [1] : vector<16x32xf32> to vector<16xf32>
    %15 = vector.shape_cast %14 : vector<16xf32> to vector<16x1xf32>
    %cst_12 = arith.constant 3.200000e+01 : f32
    %16 = vector.broadcast %cst_12 : f32 to vector<16x1xf32>
    %17 = arith.divf %15, %16 : vector<16x1xf32>
    %18 = vector.broadcast %17 : vector<16x1xf32> to vector<16x32xf32>
    %19 = arith.subf %13, %18 : vector<16x32xf32>
    %20 = arith.mulf %19, %19 : vector<16x32xf32>
    %cst_13 = arith.constant dense<0.000000e+00> : vector<16xf32>
    %21 = vector.multi_reduction <add>, %20, %cst_13 [1] : vector<16x32xf32> to vector<16xf32>
    %22 = vector.shape_cast %21 : vector<16xf32> to vector<16x1xf32>
    %cst_14 = arith.constant 3.200000e+01 : f32
    %23 = vector.broadcast %cst_14 : f32 to vector<16x1xf32>
    %24 = arith.divf %22, %23 : vector<16x1xf32>
    %25 = vector.broadcast %17 : vector<16x1xf32> to vector<16x32xf32>
    %26 = arith.subf %13, %25 : vector<16x32xf32>
    %cst_15 = arith.constant 9.99999974E-6 : f32
    %27 = vector.broadcast %cst_15 : f32 to vector<16x1xf32>
    %28 = arith.addf %24, %27 : vector<16x1xf32>
    %29 = math.rsqrt %28 : vector<16x1xf32>
    %30 = vector.broadcast %29 : vector<16x1xf32> to vector<16x32xf32>
    %31 = arith.mulf %26, %30 : vector<16x32xf32>
    %c0_16 = arith.constant 0 : index
    %c0_17 = arith.constant 0 : index
    %32 = vector.load %arg6[%c0_16, %c0_17] : memref<1x32xf32, #tpu.memory_space<vmem>>, vector<1x32xf32>
    %33 = vector.broadcast %32 : vector<1x32xf32> to vector<16x32xf32>
    %34 = arith.mulf %31, %33 : vector<16x32xf32>
    %c0_18 = arith.constant 0 : index
    %c0_19 = arith.constant 0 : index
    %35 = vector.load %arg7[%c0_18, %c0_19] : memref<1x32xf32, #tpu.memory_space<vmem>>, vector<1x32xf32>
    %36 = vector.broadcast %35 : vector<1x32xf32> to vector<16x32xf32>
    %37 = arith.addf %34, %36 : vector<16x32xf32>
    %c0_20 = arith.constant 0 : index
    %c0_21 = arith.constant 0 : index
    %38 = vector.load %arg8[%c0_20, %c0_21] : memref<16x32xf32, #tpu.memory_space<vmem>>, vector<16x32xf32>
    tpu.vector_store %arg8[%c0_20, %c0_21], %37 {strides = array<i32>} : memref<16x32xf32, #tpu.memory_space<vmem>>, vector<16x32xf32>,
    return
  }
  func.func @transform_0(%arg0: i32) -> (i32, i32) {
    %c0_i32 = arith.constant 0 : i32
    %c0_i32_0 = arith.constant 0 : i32
    return %arg0, %c0_i32 : i32, i32
  }
  func.func @transform_1(%arg0: i32) -> (i32, i32) {
    %c0_i32 = arith.constant 0 : i32
    %c0_i32_0 = arith.constant 0 : i32
    %c0_i32_1 = arith.constant 0 : i32
    return %c0_i32, %c0_i32_0 : i32, i32
  }
  func.func @transform_2(%arg0: i32) -> (i32, i32) {
    %c0_i32 = arith.constant 0 : i32
    %c0_i32_0 = arith.constant 0 : i32
    %c0_i32_1 = arith.constant 0 : i32
    return %c0_i32, %c0_i32_0 : i32, i32
  }
  func.func @transform_3(%arg0: i32) -> (i32, i32) {
    %c0_i32 = arith.constant 0 : i32
    %c0_i32_0 = arith.constant 0 : i32
    %c0_i32_1 = arith.constant 0 : i32
    return %c0_i32, %c0_i32_0 : i32, i32
  }
  func.func @transform_4(%arg0: i32) -> (i32, i32) {
    %c0_i32 = arith.constant 0 : i32
    %c0_i32_0 = arith.constant 0 : i32
    %c0_i32_1 = arith.constant 0 : i32
    return %c0_i32, %c0_i32_0 : i32, i32
  }
  func.func @transform_5(%arg0: i32) -> (i32, i32) {
    %c0_i32 = arith.constant 0 : i32
    %c0_i32_0 = arith.constant 0 : i32
    %c0_i32_1 = arith.constant 0 : i32
    return %c0_i32, %c0_i32_0 : i32, i32
  }
  func.func @transform_6(%arg0: i32) -> (i32, i32) {
    %c0_i32 = arith.constant 0 : i32
    %c0_i32_0 = arith.constant 0 : i32
    %c0_i32_1 = arith.constant 0 : i32
    return %c0_i32, %c0_i32_0 : i32, i32
  }
  func.func @transform_7(%arg0: i32) -> (i32, i32) {
    %c0_i32 = arith.constant 0 : i32
    %c0_i32_0 = arith.constant 0 : i32
    return %arg0, %c0_i32 : i32, i32
  }
}

module attributes {stable_mosaic.version = 11 : i64} {
  func.func @ffn_ln_kernel(%arg0: i32, %arg1: memref<16x32xf32, #tpu.memory_space<vmem>>, %arg2: memref<32x64xf32, #tpu.memory_space<vmem>>, %arg3: memref<1x64xf32, #tpu.memory_space<vmem>>, %arg4: memref<64x32xf32, #tpu.memory_space<vmem>>, %arg5: memref<1x32xf32, #tpu.memory_space<vmem>>, %arg6: memref<1x32xf32, #tpu.memory_space<vmem>>, %arg7: memref<1x32xf32, #tpu.memory_space<vmem>>, %arg8: memref<16x32xf32, #tpu.memory_space<vmem>>) attributes {dimension_semantics = [#tpu.dimension_semantics<parallel>], iteration_bounds = array<i64: 1>, scalar_prefetch = 0 : i64, scratch_operands = 0 : i64, tpu.core_type = #tpu.core_type<tc>, window_params = [{transform_indices = @transform_0, window_bounds = array<i64: 16, 32>}, {pipeline_mode = #tpu.pipeline_mode<synchronous>, transform_indices = @transform_1, window_bounds = array<i64: 32, 64>}, {pipeline_mode = #tpu.pipeline_mode<synchronous>, transform_indices = @transform_2, window_bounds = array<i64: 1, 64>}, {pipeline_mode = #tpu.pipeline_mode<synchronous>, transform_indices = @transform_3, window_bounds = array<i64: 64, 32>}, {pipeline_mode = #tpu.pipeline_mode<synchronous>, transform_indices = @transform_4, window_bounds = array<i64: 1, 32>}, {pipeline_mode = #tpu.pipeline_mode<synchronous>, transform_indices = @transform_5, window_bounds = array<i64: 1, 32>}, {pipeline_mode = #tpu.pipeline_mode<synchronous>, transform_indices = @transform_6, window_bounds = array<i64: 1, 32>}, {transform_indices = @transform_7, window_bounds = array<i64: 16, 32>}]} {
    %c0 = arith.constant 0 : index
    %c0_0 = arith.constant 0 : index
    %0 = vector.load %arg1[%c0, %c0_0] : memref<16x32xf32, #tpu.memory_space<vmem>>, vector<16x32xf32>
    %c0_1 = arith.constant 0 : index
    %c0_2 = arith.constant 0 : index
    %1 = vector.load %arg2[%c0_1, %c0_2] : memref<32x64xf32, #tpu.memory_space<vmem>>, vector<32x64xf32>
    %cst = arith.constant dense<0.000000e+00> : vector<16x64xf32>
    %2 = tpu.matmul %0, %1, %cst {dimension_numbers = #tpu.dot_dimension_numbers<[1], [0], [0], [1], [0, 0, 1, 1], [], []>} : vector<16x32xf32>, vector<32x64xf32>, vector<16x64xf32> -> vector<16x64xf32>
    %c0_3 = arith.constant 0 : index
    %c0_4 = arith.constant 0 : index
    %3 = vector.load %arg3[%c0_3, %c0_4] : memref<1x64xf32, #tpu.memory_space<vmem>>, vector<1x64xf32>
    %4 = vector.broadcast %3 : vector<1x64xf32> to vector<16x64xf32>
    %5 = arith.addf %2, %4 : vector<16x64xf32>
    %cst_5 = arith.constant 0.000000e+00 : f32
    %6 = vector.broadcast %cst_5 : f32 to vector<16x64xf32>
    %7 = arith.maximumf %5, %6 : vector<16x64xf32>
    %c0_6 = arith.constant 0 : index
    %c0_7 = arith.constant 0 : index
    %8 = vector.load %arg4[%c0_6, %c0_7] : memref<64x32xf32, #tpu.memory_space<vmem>>, vector<64x32xf32>
    %cst_8 = arith.constant dense<0.000000e+00> : vector<16x32xf32>
    %9 = tpu.matmul %7, %8, %cst_8 {dimension_numbers = #tpu.dot_dimension_numbers<[1], [0], [0], [1], [0, 0, 1, 1], [], []>} : vector<16x64xf32>, vector<64x32xf32>, vector<16x32xf32> -> vector<16x32xf32>
    %c0_9 = arith.constant 0 : index
    %c0_10 = arith.constant 0 : index
    %10 = vector.load %arg5[%c0_9, %c0_10] : memref<1x32xf32, #tpu.memory_space<vmem>>, vector<1x32xf32>
    %11 = vector.broadcast %10 : vector<1x32xf32> to vector<16x32xf32>
    %12 = arith.addf %9, %11 : vector<16x32xf32>
    %13 = arith.addf %0, %12 : vector<16x32xf32>
    %cst_11 = arith.constant dense<0.000000e+00> : vector<16xf32>
    %14 = vector.multi_reduction <add>, %13, %cst_11 [1] : vector<16x32xf32> to vector<16xf32>
    %15 = vector.shape_cast %14 : vector<16xf32> to vector<16x1xf32>
    %cst_12 = arith.constant 3.200000e+01 : f32
    %16 = vector.broadcast %cst_12 : f32 to vector<16x1xf32>
    %17 = arith.divf %15, %16 : vector<16x1xf32>
    %18 = vector.broadcast %17 : vector<16x1xf32> to vector<16x32xf32>
    %19 = arith.subf %13, %18 : vector<16x32xf32>
    %20 = arith.mulf %19, %19 : vector<16x32xf32>
    %cst_13 = arith.constant dense<0.000000e+00> : vector<16xf32>
    %21 = vector.multi_reduction <add>, %20, %cst_13 [1] : vector<16x32xf32> to vector<16xf32>
    %22 = vector.shape_cast %21 : vector<16xf32> to vector<16x1xf32>
    %cst_14 = arith.constant 3.200000e+01 : f32
    %23 = vector.broadcast %cst_14 : f32 to vector<16x1xf32>
    %24 = arith.divf %22, %23 : vector<16x1xf32>
    %25 = vector.broadcast %17 : vector<16x1xf32> to vector<16x32xf32>
    %26 = arith.subf %13, %25 : vector<16x32xf32>
    %cst_15 = arith.constant 9.99999974E-6 : f32
    %27 = vector.broadcast %cst_15 : f32 to vector<16x1xf32>
    %28 = arith.addf %24, %27 : vector<16x1xf32>
    %29 = math.rsqrt %28 : vector<16x1xf32>
    %30 = vector.broadcast %29 : vector<16x1xf32> to vector<16x32xf32>
    %31 = arith.mulf %26, %30 : vector<16x32xf32>
    %c0_16 = arith.constant 0 : index
    %c0_17 = arith.constant 0 : index
    %32 = vector.load %arg6[%c0_16, %c0_17] : memref<1x32xf32, #tpu.memory_space<vmem>>, vector<1x32xf32>
    %33 = vector.broadcast %32 : vector<1x32xf32> to vector<16x32xf32>
    %34 = arith.mulf %31, %33 : vector<16x32xf32>
    %c0_18 = arith.constant 0 : index
    %c0_19 = arith.constant 0 : index
    %35 = vector.load %arg7[%c0_18, %c0_19] : memref<1x32xf32, #tpu.memory_space<vmem>>, vector<1x32xf32>
    %36 = vector.broadcast %35 : vector<1x32xf32> to vector<16x32xf32>
    %37 = arith.addf %34, %36 : vector<16x32xf32>
    %c0_20 = arith.constant 0 : index
    %c0_21 = arith.constant 0 : index
    %38 = vector.load %arg8[%c0_20, %c0_21] : memref<16x32xf32, #tpu.memory_space<vmem>>, vector<16x32xf32>
    tpu.vector_store %arg8[%c0_20, %c0_21], %37 {strides = array<i32>} : memref<16x32xf32, #tpu.memory_space<vmem>>, vector<16x32xf32>,
    return
  }
  func.func @transform_0(%arg0: i32) -> (i32, i32) {
    %c0_i32 = arith.constant 0 : i32
    %c0_i32_0 = arith.constant 0 : i32
    return %arg0, %c0_i32 : i32, i32
  }
  func.func @transform_1(%arg0: i32) -> (i32, i32) {
    %c0_i32 = arith.constant 0 : i32
    %c0_i32_0 = arith.constant 0 : i32
    %c0_i32_1 = arith.constant 0 : i32
    return %c0_i32, %c0_i32_0 : i32, i32
  }
  func.func @transform_2(%arg0: i32) -> (i32, i32) {
    %c0_i32 = arith.constant 0 : i32
    %c0_i32_0 = arith.constant 0 : i32
    %c0_i32_1 = arith.constant 0 : i32
    return %c0_i32, %c0_i32_0 : i32, i32
  }
  func.func @transform_3(%arg0: i32) -> (i32, i32) {
    %c0_i32 = arith.constant 0 : i32
    %c0_i32_0 = arith.constant 0 : i32
    %c0_i32_1 = arith.constant 0 : i32
    return %c0_i32, %c0_i32_0 : i32, i32
  }
  func.func @transform_4(%arg0: i32) -> (i32, i32) {
    %c0_i32 = arith.constant 0 : i32
    %c0_i32_0 = arith.constant 0 : i32
    %c0_i32_1 = arith.constant 0 : i32
    return %c0_i32, %c0_i32_0 : i32, i32
  }
  func.func @transform_5(%arg0: i32) -> (i32, i32) {
    %c0_i32 = arith.constant 0 : i32
    %c0_i32_0 = arith.constant 0 : i32
    %c0_i32_1 = arith.constant 0 : i32
    return %c0_i32, %c0_i32_0 : i32, i32
  }
  func.func @transform_6(%arg0: i32) -> (i32, i32) {
    %c0_i32 = arith.constant 0 : i32
    %c0_i32_0 = arith.constant 0 : i32
    %c0_i32_1 = arith.constant 0 : i32
    return %c0_i32, %c0_i32_0 : i32, i32
  }
  func.func @transform_7(%arg0: i32) -> (i32, i32) {
    %c0_i32 = arith.constant 0 : i32
    %c0_i32_0 = arith.constant 0 : i32
    return %arg0, %c0_i32 : i32, i32
  }
}

</mosaic_0001>

<bundles_post_ra>
// kernel: encoder_forward.8
= control target key start
LH: loop header
LB: loop body
LE: loop exit
PB: predicated region body
PF: predicated region fallthrough
CT: control target
= control target key end

     0   :  { %vm27_vm0 = vcmask 261120   ;;  %vm109_vm1 = vcmask 785408   ;;  %s191_s1 = inlined_call_operand.vmem [shape: f32[32,96], index: 1, kind: input, shape index: {}]   ;;  %s192_s0 = inlined_call_operand.vmem [shape: f32[16,32], index: 0, kind: input, shape index: {}]   ;;  %s193_s2 = inlined_call_operand.vmem [shape: f32[1,96], index: 2, kind: input, shape index: {}]   ;;  %s194_s3 = inlined_call_operand.vmem [shape: f32[16,96], index: 3, kind: output, shape index: {}]  }
   0x1   :  { %v16_v0 = vld [vmem:[%s191_s1] sm:$0xff]  ;;  %v17_v1 = vld [vmem:[%s191_s1 + $0x8] sm:$0xff]  ;;  %v18_v2 = vld [vmem:[%s191_s1 + $0x10] sm:$0xff] }
   0x2   :  { %v136_v3 = vpack.c.bf16 %v17_v1, %v16_v0  ;;  %v19_v4 = vld [vmem:[%s191_s1 + $0x18] sm:$0xff]  ;;  %v14_v5 = vld [vmem:[%s192_s0] sm:$0xff]  ;;  %v15_v7 = vld [vmem:[%s192_s0 + $0x8] sm:$0xff] }
   0x3   :  { %v140_v6 = vpack.c.bf16 %v19_v4, %v18_v2  ;;  %133 = vmatprep.mubr.msk.f32.mxu0 %vm27_vm0, %v14_v5  ;;  %v116_v8 = vld [vmem:[%s193_s2] ss:$0 sm:$0xff] }
   0x4   :  { %137 = vmatprep.subr.bf16.mxu0 %v136_v3 }
   0x5   :  { %139 = vmatpush3.bf16.msra.mxu0 %v136_v3 }
   0x6   :  { %141 = vmatprep.subr.bf16.mxu0 %v140_v6 }
   0x9   :  { %143 = vmatpush3.bf16.msra.mxu0 %v140_v6 }
   0xc   :  { %134 = vmatmul.mubr.msk.f32.vlgmr.msra.gmra.mrb[0].mxu0 %vm27_vm0, %v15_v7 }
  0xdf   :  { %v135_v9 = vpop.f32.mrb[0].mxu0 }
  0xe0   :  { %v106_v10 = vadd.f32 %v135_v9, %v116_v8  ;;  %v100_v11 = vpop.f32.mrb[1].mxu0 }
  0xe1   :  { %v101_v12 = vadd.f32 %v116_v8, %v100_v11 }
  0xe2   :  { %111 = vst.msk [vmem:[%s194_s3 + $0x8] sm:$0xff] %vm109_vm1, %v106_v10 }
  0xe3   :  { %110 = vst.msk [vmem:[%s194_s3] sm:$0xff] %vm109_vm1, %v101_v12 }

// kernel: encoder_forward.9
= control target key start
LH: loop header
LB: loop body
LE: loop exit
PB: predicated region body
PF: predicated region fallthrough
CT: control target
= control target key end

     0   :  { %s935_s15 = smov 0   ;;  %s937_s16 = smov 0   ;;  %s1013_s0 = inlined_call_operand.vmem [shape: f32[2,4,8,8], index: 0, kind: input, shape index: {}]   ;;  %s1014_s1 = inlined_call_operand.vmem [shape: f32[2,4,8,8], index: 1, kind: input, shape index: {}]   ;;  %s1015_s2 = inlined_call_operand.vmem [shape: f32[2,4,8,8], index: 2, kind: input, shape index: {}]   ;;  %s1016_s3 = inlined_call_operand.vmem [shape: f32[4,2,8,8], index: 3, kind: input, shape index: {}]   ;;  %s1017_s4 = inlined_call_operand.vmem [shape: f32[2,4,8,8], index: 4, kind: output, shape index: {}]  }
   0x1   :  { %s939_s17 = smov 0   ;;  %s941_s18 = smov 0  }
   0x2   :  { %s943_s19 = smov 0  }
   0x3 LB: > { %s36_s20 = sadd.s32 1, %s896_s17  ;;  %s40_s21 = sadd.s32 1, %s900_s18  ;;  %s904_s19 = sphi %s943_s19, %s14_s19   ;;  %s900_s18 = sphi %s941_s18, %s1021_s18   ;;  %s896_s17 = sphi %s939_s17, %s1020_s17   ;;  %s892_s16 = sphi %s937_s16, %s1019_s16   ;;  %s888_s15 = sphi %s935_s15, %s1018_s15  }
   0x4   : > { %p38_p0 = scmp.ge.s32.totalorder %s36_s20, 4  ;;  %p784_p1 = scmp.ge.s32.totalorder %s904_s19, 1 }
   0x5   : > { %p267_p2 = scmp.lt.s32.totalorder %s904_s19, 9 }
   0x6   : > { %s1023_s20 = smov (%p38_p0, %s36_s20), 0  ;;  %s1025_s21 = smov (!%p38_p0, %s40_s21), %s900_s18 }
   0x7   : > { %p268_p3 = pnand %p784_p1, %p267_p2  ;;  %p42_p4 = scmp.ge.s32.totalorder %s1025_s21, 2 }
   0x8   : > { %p341_p5 = scmp.lt.s32.totalorder (!%p268_p3), %s892_s16, 1  ;;  %p343_p6 = scmp.lt.s32.totalorder (!%p268_p3), %s888_s15, 3  ;;  %vm406_vm0 = vcmask (!%p268_p3), 64512   ;;  %v906_v0 = vmov (!%p268_p3), 0.0   ;;  %vm907_vm1 = vmmov (!%p268_p3), 0   ;;  %vm403_vm2 = vcmask (!%p268_p3), 7168  }
   0x9   : > { %s1027_s21 = smov (%p42_p4, %s1025_s21), 0  ;;  %271 = sbr.rel (%p268_p3) target bundleno = 822 (0x336), region = 36 }
   0xa   : > { %804 = vmatprep.subr.mxu0 (!%p268_p3), %v906_v0  ;;  %407 = vst.msk [vmem:[#allocation4] sm:$0xff] (!%p268_p3), %vm406_vm0, %v906_v0  ;;  %806 = vmatprep.mubr.msk.f32.mxu0 (!%p268_p3), %vm907_vm1, %v906_v0  ;;  %v908_v3 = vmov (!%p268_p3), -inf   ;;  %v909_v9 = vmov (!%p268_p3), 0  }
   0xb   : > { %809 = vmatprep.subr.mxu1 (!%p268_p3), %v906_v0  ;;  %811 = vmatprep.mubr.msk.f32.mxu1 (!%p268_p3), %vm907_vm1, %v906_v0  ;;  %404 = vst.msk [vmem:[#allocation2] sm:$0xff] (!%p268_p3), %vm403_vm2, %v908_v3  ;;  %405 = vst.msk [vmem:[#allocation3] sm:$0xff] (!%p268_p3), %vm403_vm2, %v906_v0 }
   0xc   : > { %858 = vset.pattern.permute.xlu0 (!%p268_p3), %v909_v9  ;;  %859 = vset.pattern.permute.xlu1 (!%p268_p3), %v909_v9 }
  0x10   : > { %s1029_s16 = smov (!%p341_p5, %s892_s16), 1  ;;  %s1031_s15 = smov (!%p343_p6, %s888_s15), 3 }
  0x11   : > { %s785_s22 = sshll.u32 %s1029_s16, 2  ;;  %s791_s24 = sshll.u32 %s1031_s15, 1  ;;  %v512_v28 = vld [vmem:[#allocation4] sm:$0xff] }
  0x12   : > { %s349_s23 = sadd.s32 %s785_s22, %s1031_s15  ;;  %s385_s26 = sadd.s32 %s791_s24, %s1029_s16  ;;  %v488_v10 = vld [vmem:[#allocation2] sm:$0xff]  ;;  %v504_v22 = vld [vmem:[#allocation3] sm:$0xff] }
  0x13   : > { %s966_s25 = sshll.u32 %s349_s23, 3  ;;  %s792_s7 = sshll.u32 %s385_s26, 3 }
  0x14   : > { %s362_s29 = scalar_lea.vmem %s1014_s1, %s966_s25  ;;  %s351_s6 = scalar_lea.vmem %s1013_s0, %s966_s25 }
  0x15   : > { %v409_v1 = vld [vmem:[%s362_s29] sm:$0xff]  ;;  %s387_s10 = scalar_lea.vmem %s1016_s3, %s792_s7  ;;  %s373_s13 = scalar_lea.vmem %s1015_s2, %s966_s25 }
  0x16   : > { %805 = vmatpush3.xpose.msk.msra.mxu0 %vm406_vm0, %v409_v1  ;;  %v408_v2 = vld [vmem:[%s351_s6] sm:$0xff]  ;;  %s398_s16 = scalar_lea.vmem %s1017_s4, %s966_s25 }
  0x17   : > { %v410_v4 = vld [vmem:[%s387_s10] sm:$0xff] }
  0x18   : > { %v519_v14 = vld [vmem:[%s373_s13] sm:$0xff] }
  0x19   : > { %807 = vmatmul.mubr.msk.f32.vlgmr.msra.gmra.mrb[0].mxu0 %vm406_vm0, %v408_v2  ;;  %810 = vmatpush3.msra.mxu1 %v519_v14 }
  0xec   : > { %v484_v5 = vpop.f32.mrb[0].mxu0 }
  0xed   : > { %v485_v6 = vadd.f32 %v484_v5, %v410_v4  ;;  %v808_v7 = vpop.f32.mrb[1].mxu0 }
  0xef   : > { %v489_v8 = vsel %vm406_vm0, %v485_v6, -inf }
  0xf0   : > { %490 = vmax.xlane.f32.xlu0 %v489_v8 }
 0x17d   : > { %v491_v11 = vpop.xlane.xlu0 %490 }
 0x17e   : > { %v492_v12 = vmax.f32 %v488_v10, %v491_v11 }
 0x180   : > { %v493_v13 = vsub.f32 %v488_v10, %v492_v12  ;;  %595 = vst.msk [vmem:[#allocation2] sm:$0xff] %vm403_vm2, %v492_v12  ;;  %498 = vperm.xlu0 %858, %v492_v12  }
 0x182   : > { %v494_v20 = vmul.f32 1.442695, %v493_v13 }
 0x1ff   : > { %v499_v15 = vpop.permute.xlu0 %498 }
 0x200   : > { %v501_v16 = vsub.f32 %v485_v6, %v499_v15 }
 0x202   : > { %v502_v17 = vmul.f32 1.442695, %v501_v16 }
 0x204   : > { %860 = vpow2.f32 %v502_v17 }
 0x205   : > { %862 = vpow2.f32 %v494_v20 }
 0x20e   : > { %v861_v18 = vpop.eup %860 }
 0x20f   : > { %812 = vmatmul.mubr.msk.f32.vlgmr.msra.gmra.mrb[0].mxu1 %vm406_vm0, %v861_v18  ;;  %v506_v19 = vsel %vm406_vm0, %v861_v18, 0.0  ;;  %v863_v21 = vpop.eup %862 }
 0x210   : > { %507 = vadd.xlane.f32.xlu1 %v506_v19  ;;  %v505_v23 = vmul.f32 %v863_v21, %v504_v22 }
 0x221   : > { %515 = vperm.xlu1 %859, %v863_v21  }
 0x29d   : > { %v508_v24 = vpop.xlane.xlu1 %507 }
 0x29e   : > { %v509_v25 = vadd.f32 %v508_v24, %v505_v23 }
 0x2a0   : > { %511 = vst.msk [vmem:[#allocation3] sm:$0xff] %vm403_vm2, %v509_v25 }
 0x2a1   : > { %v516_v29 = vpop.permute.xlu1 %515 }
 0x2a2   : > { %v518_v30 = vmul.f32 %v516_v29, %v512_v28 }
 0x2a7   : > { %v600_v26 = vld [vmem:[#allocation3] sm:$0xff] }
 0x2a8   : > { %864 = vrcp.f32 %v600_v26 }
 0x2b2   : > { %v865_v27 = vpop.eup %864 }
 0x2b3   : > { %604 = vperm.xlu1 %859, %v865_v27  }
 0x2e2   : > { %v589_v31 = vpop.f32.mrb[0].mxu1 }
 0x2e3   : > { %v593_v32 = vadd.f32 %v589_v31, %v518_v30  ;;  %v813_v33 = vpop.f32.mrb[1].mxu1 }
 0x2e5   : > { %594 = vst.msk [vmem:[#allocation4] sm:$0xff] %vm406_vm0, %v593_v32 }
 0x2ec   : > { %v599_v34 = vld [vmem:[#allocation4] sm:$0xff] }
 0x332   : > { %v605_v35 = vpop.permute.xlu1 %604 }
 0x333   : > { %v607_v36 = vmul.f32 %v605_v35, %v599_v34 }
 0x335   : > { %608 = vst.msk [vmem:[%s398_s16] sm:$0xff] %vm406_vm0, %v607_v36 }
 0x336 PF: > { %s14_s19 = sadd.s32 1, %s904_s19   ;;  %s1018_s15 = smov %s896_s17 }
 0x337   : > { %p11_p7 = scmp.ge.s32.totalorder %s14_s19, 10   ;;  %s1019_s16 = smov %s900_s18 }
 0x338   : > { %s1020_s17 = smov %s1023_s20  ;;  %s1021_s18 = smov %s1027_s21 }
 0x339   :  { %13 = sbr.rel (!%p11_p7) target bundleno = 3 (0x3), region = 83 }

// kernel: encoder_forward.10
= control target key start
LH: loop header
LB: loop body
LE: loop exit
PB: predicated region body
PF: predicated region fallthrough
CT: control target
= control target key end

     0   :  { %s894_s21 = smov 0   ;;  %s896_s22 = smov 0   ;;  %s970_s0 = inlined_call_operand.vmem [shape: f32[2,4,8,8], index: 0, kind: input, shape index: {}]   ;;  %s971_s1 = inlined_call_operand.vmem [shape: f32[4,8,32], index: 1, kind: input, shape index: {}]   ;;  %s972_s2 = inlined_call_operand.vmem [shape: f32[1,32], index: 2, kind: input, shape index: {}]   ;;  %s973_s3 = inlined_call_operand.vmem [shape: f32[2,8,32], index: 3, kind: input, shape index: {}]   ;;  %s974_s4 = inlined_call_operand.vmem [shape: f32[1,32], index: 4, kind: input, shape index: {}]   ;;  %s975_s5 = inlined_call_operand.vmem [shape: f32[1,32], index: 5, kind: input, shape index: {}]   ;;  %s976_s6 = inlined_call_operand.vmem [shape: f32[2,8,32], index: 6, kind: output, shape index: {}]  }
   0x1   :  { %s898_s23 = smov 0  }
   0x2 LB: > { %s28_s24 = sadd.s32 1, %s851_s22  ;;  %p756_p0 = scmp.ge.s32.totalorder %s855_s23, 1  ;;  %s855_s23 = sphi %s898_s23, %s16_s23   ;;  %s851_s22 = sphi %s896_s22, %s978_s22   ;;  %s847_s21 = sphi %s894_s21, %s977_s21  }
   0x3   : > { %p30_p1 = scmp.ge.s32.totalorder %s28_s24, 2  ;;  %p245_p2 = scmp.lt.s32.totalorder %s855_s23, 3 }
   0x5   : > { %s980_s24 = smov (%p30_p1, %s28_s24), 0  ;;  %p246_p3 = pnand %p756_p0, %p245_p2 }
   0x6   : > { %v762_v0 = vld [vmem:[%s971_s1 + $0x8] sm:$0xff] (!%p246_p3)  ;;  %v310_v1 = vld [vmem:[%s971_s1] sm:$0xff] (!%p246_p3)  ;;  %p287_p4 = scmp.lt.s32.totalorder (!%p246_p3), %s847_s21, 1  ;;  %v857_v2 = vmov (!%p246_p3), 0.0   ;;  %vm858_vm0 = vmmov (!%p246_p3), 0   ;;  %vm315_vm1 = vcmask (!%p246_p3), 64512  }
   0x7   : > { %249 = sbr.rel (%p246_p3) target bundleno = 556 (0x22c), region = 44  ;;  %785 = vmatprep.subr.mxu0 (!%p246_p3), %v857_v2  ;;  %790 = vmatprep.subr.mxu1 (!%p246_p3), %v857_v2  ;;  %v766_v3 = vld [vmem:[%s971_s1 + $0x10] sm:$0xff] (!%p246_p3)  ;;  %v769_v4 = vld [vmem:[%s971_s1 + $0x18] sm:$0xff] (!%p246_p3)  ;;  %v771_v21 = vld [vmem:[%s972_s2] ss:$0 sm:$0xff] (!%p246_p3)  ;;  %vm628_vm2 = vcmask (!%p246_p3), 261120  }
   0x8   : > { %786 = vmatpush3.msra.mxu0 (!%p246_p3), %v762_v0  ;;  %787 = vmatprep.mubr.msk.f32.mxu0 (!%p246_p3), %vm858_vm0, %v857_v2  ;;  %v772_v34 = vld [vmem:[%s974_s4] ss:$0 sm:$0xff] (!%p246_p3) }
   0x9   : > { %791 = vmatpush3.msra.mxu1 (!%p246_p3), %v310_v1  ;;  %792 = vmatprep.mubr.msk.f32.mxu1 (!%p246_p3), %vm858_vm0, %v857_v2  ;;  %v773_v36 = vld [vmem:[%s975_s5] ss:$0 sm:$0xff] (!%p246_p3) }
   0xa   : > { %795 = vmatprep.subr.mxu0 (!%p246_p3), %v857_v2  ;;  %800 = vmatprep.subr.mxu1 (!%p246_p3), %v857_v2 }
   0xe   : > { %s982_s21 = smov (!%p287_p4, %s847_s21), 1 }
   0xf   : > { %s776_s29 = sshll.u32 %s982_s21, 5  ;;  %s759_s13 = sshll.u32 %s982_s21, 3 }
  0x10   : > { %s294_s8 = scalar_lea.vmem %s970_s0, %s776_s29  ;;  %s301_s16 = scalar_lea.vmem %s973_s3, %s759_s13 }
  0x11   : > { %v761_v5 = vld [vmem:[%s294_s8 + $0x8] sm:$0xff]  ;;  %v309_v6 = vld [vmem:[%s294_s8] sm:$0xff]  ;;  %v765_v7 = vld [vmem:[%s294_s8 + $0x10] sm:$0xff]  ;;  %s308_s29 = scalar_lea.vmem %s976_s6, %s759_s13 }
  0x12   : > { %788 = vmatmul.mubr.msk.f32.vlgmr.msra.gmra.mrb[0].mxu0 %vm315_vm1, %v761_v5  ;;  %793 = vmatmul.mubr.msk.f32.vlgmr.msra.gmra.mrb[0].mxu1 %vm315_vm1, %v309_v6  ;;  %v768_v8 = vld [vmem:[%s294_s8 + $0x18] sm:$0xff]  ;;  %v618_v19 = vld [vmem:[%s301_s16] sm:$0xff] }
  0x13   : > { %796 = vmatpush3.msra.mxu0 %v766_v3  ;;  %801 = vmatpush3.msra.mxu1 %v769_v4 }
  0x14   : > { %797 = vmatprep.mubr.msk.f32.mxu0 %vm858_vm0, %v857_v2  ;;  %802 = vmatprep.mubr.msk.f32.mxu1 %vm858_vm0, %v857_v2 }
  0x16   : > { %798 = vmatmul.mubr.msk.f32.vlgmr.msra.gmra.mrb[2].mxu0 %vm315_vm1, %v765_v7  ;;  %803 = vmatmul.mubr.msk.f32.vlgmr.msra.gmra.mrb[2].mxu1 %vm315_vm1, %v768_v8 }
  0xe5   : > { %v385_v9 = vpop.f32.mrb[0].mxu0  ;;  %v458_v10 = vpop.f32.mrb[0].mxu1 }
  0xe6   : > { %v459_v11 = vadd.f32 %v458_v10, %v385_v9  ;;  %v789_v12 = vpop.f32.mrb[1].mxu0  ;;  %v794_v13 = vpop.f32.mrb[1].mxu1 }
  0xe9   : > { %v535_v14 = vpop.f32.mrb[2].mxu0  ;;  %v613_v15 = vpop.f32.mrb[2].mxu1 }
  0xea   : > { %v539_v16 = vadd.f32 %v535_v14, %v459_v11  ;;  %v799_v17 = vpop.f32.mrb[3].mxu0  ;;  %v804_v18 = vpop.f32.mrb[3].mxu1 }
  0xec   : > { %v617_v20 = vadd.f32 %v613_v15, %v539_v16 }
  0xee   : > { %v619_v22 = vadd.f32 %v618_v19, %v617_v20 }
  0xf0   : > { %v627_v23 = vadd.f32 %v771_v21, %v619_v22 }
  0xf2   : > { %v629_v24 = vsel %vm628_vm2, %v627_v23, 0.0 }
  0xf3   : > { %630 = vadd.xlane.f32.xlu0 %v629_v24 }
 0x180   : > { %v631_v25 = vpop.xlane.xlu0 %630 }
 0x181   : > { %v633_v26 = vmul.f32 0.03125, %v631_v25 }
 0x183   : > { %v634_v27 = vsub.f32 %v627_v23, %v633_v26 }
 0x185   : > { %v635_v28 = vmul.f32 %v634_v27, %v634_v27 }
 0x187   : > { %v636_v29 = vsel %vm628_vm2, %v635_v28, 0.0 }
 0x188   : > { %637 = vadd.xlane.f32.xlu0 %v636_v29 }
 0x215   : > { %v638_v30 = vpop.xlane.xlu0 %637 }
 0x216   : > { %v639_v31 = vmul.f32 0.03125, %v638_v30 }
 0x218   : > { %v640_v32 = vadd.f32 1e-05, %v639_v31 }
 0x21a   : > { %831 = vrsqrt.f32 %v640_v32 }
 0x224   : > { %v832_v33 = vpop.eup %831 }
 0x225   : > { %v642_v35 = vmul.f32 %v832_v33, %v634_v27 }
 0x227   : > { %v650_v37 = vmul.f32 %v772_v34, %v642_v35 }
 0x229   : > { %v658_v38 = vadd.f32 %v773_v36, %v650_v37 }
 0x22b   : > { %659 = vst.msk [vmem:[%s308_s29] sm:$0xff] %vm628_vm2, %v658_v38 }
 0x22c PF: > { %s16_s23 = sadd.s32 1, %s855_s23   ;;  %s977_s21 = smov %s851_s22 }
 0x22d   : > { %p13_p5 = scmp.ge.s32.totalorder %s16_s23, 4   ;;  %s978_s22 = smov %s980_s24 }
 0x22f   :  { %15 = sbr.rel (!%p13_p5) target bundleno = 2 (0x2), region = 83 }

// kernel: encoder_forward.11
= control target key start
LH: loop header
LB: loop body
LE: loop exit
PB: predicated region body
PF: predicated region fallthrough
CT: control target
= control target key end

     0   :  { %vm39_vm0 = vcmask 261120   ;;  %vm138_vm1 = vcmask 523264   ;;  %s463_s1 = inlined_call_operand.vmem [shape: f32[32,64], index: 1, kind: input, shape index: {}]   ;;  %s464_s0 = inlined_call_operand.vmem [shape: f32[16,32], index: 0, kind: input, shape index: {}]   ;;  %s465_s3 = inlined_call_operand.vmem [shape: f32[64,32], index: 3, kind: input, shape index: {}]   ;;  %s466_s2 = inlined_call_operand.vmem [shape: f32[1,64], index: 2, kind: input, shape index: {}]   ;;  %s467_s4 = inlined_call_operand.vmem [shape: f32[1,32], index: 4, kind: input, shape index: {}]   ;;  %s468_s5 = inlined_call_operand.vmem [shape: f32[1,32], index: 5, kind: input, shape index: {}]   ;;  %s469_s6 = inlined_call_operand.vmem [shape: f32[1,32], index: 6, kind: input, shape index: {}]   ;;  %s470_s7 = inlined_call_operand.vmem [shape: f32[16,32], index: 7, kind: output, shape index: {}]  }
   0x1   :  { %v28_v0 = vld [vmem:[%s463_s1] sm:$0xff]  ;;  %v29_v1 = vld [vmem:[%s463_s1 + $0x8] sm:$0xff]  ;;  %v30_v2 = vld [vmem:[%s463_s1 + $0x10] sm:$0xff] }
   0x2   :  { %v327_v3 = vpack.c.bf16 %v29_v1, %v28_v0  ;;  %v31_v4 = vld [vmem:[%s463_s1 + $0x18] sm:$0xff]  ;;  %v26_v5 = vld [vmem:[%s464_s0] sm:$0xff]  ;;  %v124_v8 = vld [vmem:[%s465_s3 + $0x8] sm:$0xff] }
   0x3   :  { %v331_v6 = vpack.c.bf16 %v31_v4, %v30_v2  ;;  %305 = vmatprep.mubr.msk.f32.mxu0 %vm39_vm0, %v26_v5  ;;  %v123_v7 = vld [vmem:[%s465_s3] sm:$0xff]  ;;  %v125_v9 = vld [vmem:[%s465_s3 + $0x10] sm:$0xff]  ;;  %v126_v11 = vld [vmem:[%s465_s3 + $0x18] sm:$0xff] }
   0x4   :  { %328 = vmatprep.subr.bf16.mxu0 %v327_v3  ;;  %v335_v10 = vpack.c.bf16 %v124_v8, %v123_v7  ;;  %v339_v12 = vpack.c.bf16 %v126_v11, %v125_v9  ;;  %v127_v13 = vld [vmem:[%s465_s3 + $0x20] sm:$0xff]  ;;  %v128_v14 = vld [vmem:[%s465_s3 + $0x28] sm:$0xff]  ;;  %v129_v17 = vld [vmem:[%s465_s3 + $0x30] sm:$0xff] }
   0x5   :  { %330 = vmatpush3.bf16.msra.mxu0 %v327_v3  ;;  %v343_v15 = vpack.c.bf16 %v128_v14, %v127_v13  ;;  %v27_v16 = vld [vmem:[%s464_s0 + $0x8] sm:$0xff]  ;;  %v130_v18 = vld [vmem:[%s465_s3 + $0x38] sm:$0xff]  ;;  %v273_v20 = vld [vmem:[%s466_s2] ss:$0 sm:$0xff] }
   0x6   :  { %332 = vmatprep.subr.bf16.mxu0 %v331_v6  ;;  %336 = vmatprep.subr.bf16.mxu1 %v335_v10  ;;  %v347_v19 = vpack.c.bf16 %v130_v18, %v129_v17  ;;  %v276_v27 = vld [vmem:[%s467_s4] ss:$0 sm:$0xff] }
   0x7   :  { %338 = vmatpush3.bf16.msra.mxu1 %v335_v10  ;;  %v279_v53 = vld [vmem:[%s468_s5] ss:$0 sm:$0xff] }
   0x8   :  { %340 = vmatprep.subr.bf16.mxu1 %v339_v12  ;;  %v280_v55 = vld [vmem:[%s469_s6] ss:$0 sm:$0xff] }
   0x9   :  { %334 = vmatpush3.bf16.msra.mxu0 %v331_v6 }
   0xb   :  { %342 = vmatpush3.bf16.msra.mxu1 %v339_v12 }
   0xc   :  { %306 = vmatmul.mubr.msk.f32.vlgmr.msra.gmra.mrb[0].mxu0 %vm39_vm0, %v27_v16  ;;  %344 = vmatprep.subr.bf16.mxu1 %v343_v15 }
   0xf   :  { %346 = vmatpush3.bf16.msra.mxu1 %v343_v15 }
  0x10   :  { %348 = vmatprep.subr.bf16.mxu1 %v347_v19 }
  0x13   :  { %350 = vmatpush3.bf16.msra.mxu1 %v347_v19 }
  0xdf   :  { %v307_v21 = vpop.f32.mrb[0].mxu0 }
  0xe0   :  { %v118_v22 = vadd.f32 %v307_v21, %v273_v20  ;;  %v112_v23 = vpop.f32.mrb[1].mxu0 }
  0xe1   :  { %v113_v24 = vadd.f32 %v273_v20, %v112_v23 }
  0xe2   :  { %v122_v26 = vmax.f32 %v118_v22, 0.0 }
  0xe3   :  { %v121_v25 = vmax.f32 %v113_v24, 0.0 }
  0xe5   :  { %324 = vmatprep.mubr.msk.f32.mxu1 %vm138_vm1, %v121_v25 }
  0xe6   :  { %325 = vmatmul.mubr.msk.f32.vlgmr.msra.gmra.mrb[0].mxu1 %vm138_vm1, %v122_v26 }
 0x1b9   :  { %v326_v28 = vpop.f32.mrb[0].mxu1 }
 0x1ba   :  { %v211_v29 = vpop.f32.mrb[1].mxu1  ;;  %v217_v30 = vadd.f32 %v326_v28, %v276_v27 }
 0x1bb   :  { %v212_v31 = vadd.f32 %v276_v27, %v211_v29 }
 0x1bc   :  { %v221_v34 = vadd.f32 %v217_v30, %v27_v16 }
 0x1bd   :  { %v220_v32 = vadd.f32 %v212_v31, %v26_v5 }
 0x1be   :  { %v225_v35 = vsel %vm39_vm0, %v221_v34, 0.0 }
 0x1bf   :  { %v222_v33 = vsel %vm39_vm0, %v220_v32, 0.0 }
 0x1c0   :  { %223 = vadd.xlane.f32.xlu0 %v222_v33 }
 0x1c4   :  { %226 = vadd.xlane.f32.xlu0 %v225_v35 }
 0x24d   :  { %v224_v36 = vpop.xlane.xlu0 %223 }
 0x24e   :  { %v229_v37 = vmul.f32 0.03125, %v224_v36 }
 0x250   :  { %v231_v38 = vsub.f32 %v220_v32, %v229_v37 }
 0x251   :  { %v227_v39 = vpop.xlane.xlu0 %226 }
 0x252   :  { %v230_v40 = vmul.f32 0.03125, %v227_v39  ;;  %v233_v41 = vmul.f32 %v231_v38, %v231_v38 }
 0x254   :  { %v232_v42 = vsub.f32 %v221_v34, %v230_v40  ;;  %v235_v43 = vsel %vm39_vm0, %v233_v41, 0.0 }
 0x255   :  { %236 = vadd.xlane.f32.xlu1 %v235_v43 }
 0x256   :  { %v234_v44 = vmul.f32 %v232_v42, %v232_v42 }
 0x258   :  { %v238_v45 = vsel %vm39_vm0, %v234_v44, 0.0 }
 0x259   :  { %239 = vadd.xlane.f32.xlu1 %v238_v45 }
 0x2e2   :  { %v237_v46 = vpop.xlane.xlu1 %236 }
 0x2e3   :  { %v241_v47 = vmul.f32 0.03125, %v237_v46 }
 0x2e5   :  { %v243_v48 = vadd.f32 1e-05, %v241_v47 }
 0x2e6   :  { %v240_v49 = vpop.xlane.xlu1 %239 }
 0x2e7   :  { %351 = vrsqrt.f32 %v243_v48  ;;  %v242_v50 = vmul.f32 0.03125, %v240_v49 }
 0x2e9   :  { %v244_v51 = vadd.f32 1e-05, %v242_v50 }
 0x2eb   :  { %353 = vrsqrt.f32 %v244_v51 }
 0x2f1   :  { %v352_v52 = vpop.eup %351 }
 0x2f2   :  { %v247_v54 = vmul.f32 %v352_v52, %v231_v38 }
 0x2f4   :  { %v256_v56 = vmul.f32 %v279_v53, %v247_v54 }
 0x2f5   :  { %v354_v57 = vpop.eup %353 }
 0x2f6   :  { %v265_v58 = vadd.f32 %v280_v55, %v256_v56  ;;  %v248_v59 = vmul.f32 %v354_v57, %v232_v42 }
 0x2f8   :  { %267 = vst.msk [vmem:[%s470_s7] sm:$0xff] %vm39_vm0, %v265_v58  ;;  %v257_v60 = vmul.f32 %v279_v53, %v248_v59 }
 0x2fa   :  { %v266_v61 = vadd.f32 %v280_v55, %v257_v60 }
 0x2fc   :  { %268 = vst.msk [vmem:[%s470_s7 + $0x8] sm:$0xff] %vm39_vm0, %v266_v61 }

// kernel: encoder_forward.15
= control target key start
LH: loop header
LB: loop body
LE: loop exit
PB: predicated region body
PF: predicated region fallthrough
CT: control target
= control target key end

     0   :  { %vm40_vm0 = vcmask 261120   ;;  %s512_s0 = inlined_call_operand.vmem [shape: f32[16,32], index: 0, kind: input, shape index: {}]   ;;  %s513_s1 = inlined_call_operand.vmem [shape: f32[32,64], index: 1, kind: input, shape index: {}]   ;;  %s514_s2 = inlined_call_operand.vmem [shape: f32[1,64], index: 2, kind: input, shape index: {}]   ;;  %s515_s3 = inlined_call_operand.vmem [shape: f32[64,32], index: 3, kind: input, shape index: {}]   ;;  %s516_s4 = inlined_call_operand.vmem [shape: f32[1,32], index: 4, kind: input, shape index: {}]   ;;  %s517_s5 = inlined_call_operand.vmem [shape: f32[1,32], index: 5, kind: input, shape index: {}]   ;;  %s518_s6 = inlined_call_operand.vmem [shape: f32[1,32], index: 6, kind: input, shape index: {}]   ;;  %s519_s7 = inlined_call_operand.hbm [shape: f32[16,32], index: 7, kind: output, shape index: {}]  }
   0x1   :  { %v29_v0 = vld [vmem:[%s513_s1] sm:$0xff]  ;;  %v30_v1 = vld [vmem:[%s513_s1 + $0x8] sm:$0xff]  ;;  %v31_v2 = vld [vmem:[%s513_s1 + $0x10] sm:$0xff] }
   0x2   :  { %v340_v3 = vpack.c.bf16 %v30_v1, %v29_v0  ;;  %v32_v4 = vld [vmem:[%s513_s1 + $0x18] sm:$0xff]  ;;  %v27_v5 = vld [vmem:[%s512_s0] sm:$0xff]  ;;  %v125_v8 = vld [vmem:[%s515_s3 + $0x8] sm:$0xff] }
   0x3   :  { %v344_v6 = vpack.c.bf16 %v32_v4, %v31_v2  ;;  %318 = vmatprep.mubr.msk.f32.mxu0 %vm40_vm0, %v27_v5  ;;  %v124_v7 = vld [vmem:[%s515_s3] sm:$0xff]  ;;  %v126_v9 = vld [vmem:[%s515_s3 + $0x10] sm:$0xff]  ;;  %v127_v11 = vld [vmem:[%s515_s3 + $0x18] sm:$0xff] }
   0x4   :  { %341 = vmatprep.subr.bf16.mxu0 %v340_v3  ;;  %v348_v10 = vpack.c.bf16 %v125_v8, %v124_v7  ;;  %v352_v12 = vpack.c.bf16 %v127_v11, %v126_v9  ;;  %v128_v13 = vld [vmem:[%s515_s3 + $0x20] sm:$0xff]  ;;  %v129_v14 = vld [vmem:[%s515_s3 + $0x28] sm:$0xff] }
   0x5   :  { %343 = vmatpush3.bf16.msra.mxu0 %v340_v3 }
   0x6   :  { %12 = vsyncpa [#allocation3], 0  ;;  %345 = vmatprep.subr.bf16.mxu0 %v344_v6  ;;  %349 = vmatprep.subr.bf16.mxu1 %v348_v10  ;;  %v356_v15 = vpack.c.bf16 %v129_v14, %v128_v13  ;;  %v28_v16 = vld [vmem:[%s512_s0 + $0x8] sm:$0xff]  ;;  %v130_v17 = vld [vmem:[%s515_s3 + $0x30] sm:$0xff]  ;;  %vm139_vm1 = vcmask 523264   ;;  %s395_s9 = smov [#allocation2]  }
   0x7   :  { %351 = vmatpush3.bf16.msra.mxu1 %v348_v10  ;;  %v131_v18 = vld [vmem:[%s515_s3 + $0x38] sm:$0xff]  ;;  %v286_v20 = vld [vmem:[%s514_s2] ss:$0 sm:$0xff]  ;;  %s275_s10 = sshll.u32 %s395_s9, 4  ;;  %s276_s10 = int_to_ptr.vmem [resolvable:$true] %s275_s10 }
   0x8   :  { %353 = vmatprep.subr.bf16.mxu1 %v352_v12  ;;  %v360_v19 = vpack.c.bf16 %v131_v18, %v130_v17  ;;  %v289_v27 = vld [vmem:[%s516_s4] ss:$0 sm:$0xff]  ;;  %s371_s11 = scalar_lea.vmem %s276_s10, 256  ;;  %p376_p1 = scmp.lt.s32.totalorder %s276_s10, %s276_s10 }
   0x9   :  { %347 = vmatpush3.bf16.msra.mxu0 %v344_v6  ;;  %v292_v53 = vld [vmem:[%s517_s5] ss:$0 sm:$0xff]  ;;  %p372_p0 = scmp.ne.s32.totalorder %s276_s10, %s371_s11  ;;  %p377_p2 = scmp.lt.s32.totalorder %s371_s11, %s371_s11 }
   0xa   :  { %v293_v55 = vld [vmem:[%s518_s6] ss:$0 sm:$0xff] }
   0xb   :  { %355 = vmatpush3.bf16.msra.mxu1 %v352_v12  ;;  %p378_p3 = por %p377_p2, %p376_p1 }
   0xc   :  { %319 = vmatmul.mubr.msk.f32.vlgmr.msra.gmra.mrb[0].mxu0 %vm40_vm0, %v28_v16  ;;  %357 = vmatprep.subr.bf16.mxu1 %v356_v15 }
   0xd   :  { %p379_p4 = pnand %p378_p3, %p372_p0 }
   0xf   :  { %359 = vmatpush3.bf16.msra.mxu1 %v356_v15 }
  0x10   :  { %361 = vmatprep.subr.bf16.mxu1 %v360_v19 }
  0x13   :  { %363 = vmatpush3.bf16.msra.mxu1 %v360_v19 }
  0xdf   :  { %v320_v21 = vpop.f32.mrb[0].mxu0 }
  0xe0   :  { %v119_v22 = vadd.f32 %v320_v21, %v286_v20  ;;  %v113_v23 = vpop.f32.mrb[1].mxu0 }
  0xe1   :  { %v114_v24 = vadd.f32 %v286_v20, %v113_v23 }
  0xe2   :  { %v123_v26 = vmax.f32 %v119_v22, 0.0 }
  0xe3   :  { %v122_v25 = vmax.f32 %v114_v24, 0.0 }
  0xe5   :  { %337 = vmatprep.mubr.msk.f32.mxu1 %vm139_vm1, %v122_v25 }
  0xe6   :  { %338 = vmatmul.mubr.msk.f32.vlgmr.msra.gmra.mrb[0].mxu1 %vm139_vm1, %v123_v26 }
 0x1b9   :  { %v339_v28 = vpop.f32.mrb[0].mxu1 }
 0x1ba   :  { %v212_v29 = vpop.f32.mrb[1].mxu1  ;;  %v218_v30 = vadd.f32 %v339_v28, %v289_v27 }
 0x1bb   :  { %v213_v31 = vadd.f32 %v289_v27, %v212_v29 }
 0x1bc   :  { %v222_v34 = vadd.f32 %v218_v30, %v28_v16 }
 0x1bd   :  { %v221_v32 = vadd.f32 %v213_v31, %v27_v5 }
 0x1be   :  { %v226_v35 = vsel %vm40_vm0, %v222_v34, 0.0 }
 0x1bf   :  { %v223_v33 = vsel %vm40_vm0, %v221_v32, 0.0 }
 0x1c0   :  { %224 = vadd.xlane.f32.xlu0 %v223_v33 }
 0x1c4   :  { %227 = vadd.xlane.f32.xlu0 %v226_v35 }
 0x24d   :  { %v225_v36 = vpop.xlane.xlu0 %224 }
 0x24e   :  { %v230_v37 = vmul.f32 0.03125, %v225_v36 }
 0x250   :  { %v232_v38 = vsub.f32 %v221_v32, %v230_v37 }
 0x251   :  { %v228_v39 = vpop.xlane.xlu0 %227 }
 0x252   :  { %v231_v40 = vmul.f32 0.03125, %v228_v39  ;;  %v234_v41 = vmul.f32 %v232_v38, %v232_v38 }
 0x254   :  { %v233_v42 = vsub.f32 %v222_v34, %v231_v40  ;;  %v236_v43 = vsel %vm40_vm0, %v234_v41, 0.0 }
 0x255   :  { %237 = vadd.xlane.f32.xlu1 %v236_v43 }
 0x256   :  { %v235_v44 = vmul.f32 %v233_v42, %v233_v42 }
 0x258   :  { %v239_v45 = vsel %vm40_vm0, %v235_v44, 0.0 }
 0x259   :  { %240 = vadd.xlane.f32.xlu1 %v239_v45 }
 0x2e2   :  { %v238_v46 = vpop.xlane.xlu1 %237 }
 0x2e3   :  { %v242_v47 = vmul.f32 0.03125, %v238_v46 }
 0x2e5   :  { %v244_v48 = vadd.f32 1e-05, %v242_v47 }
 0x2e6   :  { %v241_v49 = vpop.xlane.xlu1 %240 }
 0x2e7   :  { %367 = vrsqrt.f32 %v244_v48  ;;  %v243_v50 = vmul.f32 0.03125, %v241_v49 }
 0x2e9   :  { %v245_v51 = vadd.f32 1e-05, %v243_v50 }
 0x2eb   :  { %369 = vrsqrt.f32 %v245_v51 }
 0x2f1   :  { %v368_v52 = vpop.eup %367 }
 0x2f2   :  { %v248_v54 = vmul.f32 %v368_v52, %v232_v38 }
 0x2f4   :  { %v257_v56 = vmul.f32 %v292_v53, %v248_v54 }
 0x2f5   :  { %v370_v57 = vpop.eup %369 }
 0x2f6   :  { %v249_v58 = vmul.f32 %v370_v57, %v233_v42  ;;  %v266_v59 = vadd.f32 %v293_v55, %v257_v56 }
 0x2f8   :  { %v258_v60 = vmul.f32 %v292_v53, %v249_v58  ;;  %268 = vst.msk [vmem:[#allocation2] sm:$0xff] %vm40_vm0, %v266_v59 }
 0x2fa   :  { %v267_v61 = vadd.f32 %v293_v55, %v258_v60 }
 0x2fc   :  { %269 = vst.msk [vmem:[#allocation2 + $0x8] sm:$0xff] %vm40_vm0, %v267_v61 }
 0x2fd   :  { %382 = shalt.err (!%p379_p4)
}
 0x2fe   :  { %s383_s12 = scalar_lea.hbm %s519_s7, 256 }
 0x2ff   :  { %p384_p5 = scmp.ne.s32.totalorder %s519_s7, %s383_s12  ;;  %p387_p6 = scmp.lt.u32.totalorder %s383_s12, %s519_s7 }
 0x301   :  { %p389_p7 = pnand %p387_p6, %p384_p5 }
 0x303   :  { %392 = shalt.err (!%p389_p7)
}
 0x304   :  { %s396_s1 = smov 128   ;;  %s397_s17 = smov 8  }
 0x305   :  { %281 = dma.vmem_to_hbm [thread:$0]  %s276_s10, 256, %s519_s7, [#allocation3], %s396_s1, %s396_s1, %s397_s17  }
 0x306   :  { %393 = dma.done.wait [#allocation3], 256  }
 0x307   :  { %394 = vsyncadd [#allocation3], 4294967040 }
 0x308   :  { %285 = vsyncpa [#allocation3], 1 }

</bundles_post_ra>
